<compile_context>
chip_gen: v7x
topology: tpu7x:2x2x1
jax: 0.10.0
libtpu: 0.0.40
codegen_flags: <defaults>
</compile_context>

<pallas_src>
import functools
import math

import jax
import jax.numpy as jnp
from jax.experimental import pallas as pl
from jax.experimental.pallas import tpu as pltpu


def _round_up(x, m):
    return -(-x // m) * m


def _tpu_generation():
    """Best-effort TPU generation detection (5 / 6 / 7); defaults to 6."""
    try:
        kind = jax.devices()[0].device_kind.lower()
    except Exception:
        return 6
    if "v7" in kind or "7x" in kind:
        return 7
    if "v6" in kind or "trillium" in kind:
        return 6
    if "v5" in kind or "v4" in kind:
        return 5
    return 6


# ----------------------------- Pallas kernel --------------------------------
def gru_head_kernel(x_ref, lens_ref,
                    w_in_ref, b_in_ref,
                    w_h_ref, b_hn_ref,
                    wr_ref, br_ref,
                    pred_ref, feat_ref,
                    gx_ref, h_ref):
    """Masked fused-GRU over one (batch block, time chunk) + linear head.

    x_ref:    (Tblk, Bblk, D4)   bf16 time-major input chunk
    lens_ref: (Bblk, 1)          int32 valid lengths (0 for padded rows)
    w_in_ref: (D4, 3*Hg)   bf16  fused, lane-padded input weights  [Wir|Wiz|Win]
    b_in_ref: (1, 3*Hg)    f32   fused biases  [bir+bhr | biz+bhz | bin]
    w_h_ref:  (Hg, 3*Hg)   bf16  fused, lane-padded hidden weights [Whr|Whz|Whn]
    b_hn_ref: (1, Hg)      f32   hidden n-gate bias (stays inside r * (.))
    wr_ref:   (1, Hg)      f32   linear_r weight row,  br_ref: (1, 1) bias
    pred_ref: (Bblk, 1)          sigmoid(linear_r(feature))
    feat_ref: (Bblk, Hg)         final GRU hidden state (lane-padded)
    gx_ref:   (Tblk, Bblk, 3*Hg) scratch: precomputed input projections (chunk)
    h_ref:    (Bblk, Hg)   f32   scratch: hidden state carried across chunks
    """
    Tblk, B, D4 = x_ref.shape
    Hg = w_h_ref.shape[0]
    tb = pl.program_id(1)

    @pl.when(tb == 0)
    def _():
        h_ref[...] = jnp.zeros_like(h_ref)

    # --- one MXU matmul for every timestep/gate of this chunk ---------------
    x_all = x_ref[...].reshape(Tblk * B, D4)                   # bf16
    gx = jnp.dot(x_all, w_in_ref[...],
                 preferred_element_type=jnp.float32) + b_in_ref[...]
    gx_ref[...] = gx.reshape(Tblk, B, 3 * Hg).astype(gx_ref.dtype)

    # Loop invariants, hoisted (JAX does not CSE broadcast_in_dim).
    w_h = w_h_ref[...]                                         # (Hg, 3Hg) bf16
    b_hn = jnp.broadcast_to(b_hn_ref[...], (B, Hg))            # (B, Hg)
    lens = lens_ref[...]                                       # (B, 1) int32
    t_base = tb * Tblk

    def step(lt, h):
        gx_t = gx_ref[lt].astype(jnp.float32)                  # (B, 3Hg)
        gh = jnp.dot(h.astype(jnp.bfloat16), w_h,
                     preferred_element_type=jnp.float32)       # (B, 3Hg)
        # Fused r/z: one add + one sigmoid over a lane-aligned 2*Hg slab.
        rz = jax.nn.sigmoid(gx_t[:, :2 * Hg] + gh[:, :2 * Hg])
        r = rz[:, :Hg]
        z = rz[:, Hg:]
        n = jnp.tanh(gx_t[:, 2 * Hg:] + r * (gh[:, 2 * Hg:] + b_hn))
        h_new = (1.0 - z) * n + z * h
        # Emulate pack_padded_sequence: freeze h once past the sequence length.
        return jnp.where(lens > (t_base + lt), h_new, h)

    h = jax.lax.fori_loop(0, Tblk, step, h_ref[...], unroll=True)
    h_ref[...] = h

    @pl.when(tb == pl.num_programs(1) - 1)
    def _():
        feat_ref[...] = h
        # N=1 head: VPU multiply + lane reduction instead of a 1-col matmul.
        logits = jnp.sum(h * wr_ref[...], axis=-1, keepdims=True) + br_ref[...]
        pred_ref[...] = jax.nn.sigmoid(logits)


def gru_head_pallas(x_tbd, lens, params, h2):
    """Run the Pallas fused-GRU + head kernel.

    x_tbd : (T, B, 4H) float32, time-major
    lens  : (B, 1) int32 (descending order)
    h2    : true (un-padded) GRU hidden size 2*h_dim
    """
    T, B, D4 = x_tbd.shape
    Hg = params["w_h_fused"].shape[0]          # lane-padded per-gate width
    H6 = 3 * Hg
    gen = _tpu_generation()

    # --- batch padding / generation-dependent batch tile ---------------------
    Bp = max(16, _round_up(B, 16))             # bf16-friendly sublane multiple
    cap = 128 if gen == 5 else 256             # 256-wide MXU on v6e/v7x
    b_block = min(Bp, cap)
    if gen == 7 and b_block > 128 and _round_up(Bp, b_block) // b_block < 2:
        b_block = 128                          # keep both v7x TensorCores busy
    Bp = _round_up(Bp, b_block)
    n_blocks = Bp // b_block

    # --- time blocking: x streams from HBM chunk by chunk --------------------
    t_block = max(1, min(T, 8))
    Tp = _round_up(T, t_block)
    n_t_blocks = Tp // t_block

    pad_b, pad_t = Bp - B, Tp - T
    x_tbd = x_tbd.astype(jnp.bfloat16)         # bf16 at the HBM boundary
    if pad_b or pad_t:
        x_tbd = jnp.pad(x_tbd, ((0, pad_t), (0, pad_b), (0, 0)))
    if pad_b:
        lens = jnp.pad(lens, ((0, pad_b), (0, 0)))

    gx_dtype = jnp.float32 if gen == 5 else jnp.bfloat16

    # --- explicit VMEM budget -------------------------------------------------
    est = (2 * (t_block * b_block * D4 * 2)                       # x, dbl-buf
           + t_block * b_block * H6 * jnp.dtype(gx_dtype).itemsize  # gx scratch
           + 2 * ((D4 + Hg) * H6 * 2 + (H6 + 2 * Hg + 1) * 4)      # weights
           + 2 * (b_block * (Hg + 1) * 4)                          # outputs
           + b_block * Hg * 4)                                     # h scratch
    vmem_cap = (48 << 20) if gen == 7 else (64 << 20)
    vmem_limit = int(min(vmem_cap, max(32 << 20, 2 * est)))

    ins = (
        x_tbd, lens,
        params["w_in_fused"].astype(jnp.bfloat16),
        params["b_in_fused"],
        params["w_h_fused"].astype(jnp.bfloat16),
        params["b_hn"],
        params["wr"], params["br"],
    )
    in_specs = [
        pl.BlockSpec((t_block, b_block, D4), lambda i, t: (t, i, 0)),
        pl.BlockSpec((b_block, 1), lambda i, t: (i, 0)),
        pl.BlockSpec((D4, H6), lambda i, t: (0, 0)),
        pl.BlockSpec((1, H6), lambda i, t: (0, 0)),
        pl.BlockSpec((Hg, H6), lambda i, t: (0, 0)),
        pl.BlockSpec((1, Hg), lambda i, t: (0, 0)),
        pl.BlockSpec((1, Hg), lambda i, t: (0, 0)),
        pl.BlockSpec((1, 1), lambda i, t: (0, 0)),
    ]
    out_specs = (
        pl.BlockSpec((b_block, 1), lambda i, t: (i, 0)),
        pl.BlockSpec((b_block, Hg), lambda i, t: (i, 0)),     # lane-dense store
    )

    pred, feat = pl.pallas_call(
        gru_head_kernel,
        out_shape=(
            jax.ShapeDtypeStruct((Bp, 1), jnp.float32),
            jax.ShapeDtypeStruct((Bp, Hg), jnp.float32),
        ),
        grid_spec=pltpu.PrefetchScalarGridSpec(
            num_scalar_prefetch=0,
            grid=(n_blocks, n_t_blocks),
            in_specs=in_specs,
            out_specs=out_specs,
            scratch_shapes=[
                pltpu.VMEM((t_block, b_block, H6), gx_dtype),   # gx chunk
                pltpu.VMEM((b_block, Hg), jnp.float32),         # carried h
            ],
        ),
        compiler_params=pltpu.CompilerParams(
            dimension_semantics=("parallel", "arbitrary"),
            vmem_limit_bytes=vmem_limit),
    )(*ins)
    return pred[:B], feat[:B, :h2]


# ----------------------------- parameter setup ------------------------------
def xavier_uniform(key, shape, gain):
    fan_out, fan_in = shape[0], shape[1]
    a = gain * math.sqrt(6.0 / (fan_in + fan_out))
    return jax.random.uniform(key, shape, jnp.float32, minval=-a, maxval=a)


def build_params(key, h_dim, num_ents, num_rels):
    """Deterministic parameter init mirroring CompGCN.__init__ shapes, emitted
    directly in the fused, lane-padded layout the kernel consumes."""
    H2 = 2 * h_dim                        # GRU hidden size
    H4 = 4 * h_dim                        # GRU input size
    Hg = max(128, _round_up(H2, 128))     # lane-aligned per-gate width
    gain = math.sqrt(2.0)                 # calculate_gain('relu')
    ks = jax.random.split(key, 8)

    ent_embeds = xavier_uniform(ks[0], (num_ents, h_dim), gain)
    rel_embeds = xavier_uniform(ks[1], (num_rels, h_dim), gain)

    # GRU weights (PyTorch gate order r, z, n).
    w_ih = xavier_uniform(ks[2], (3 * H2, H4), gain)            # (6H, 4H)
    w_hh = xavier_uniform(ks[3], (3 * H2, H2), gain)            # (6H, 2H)
    stdv = 1.0 / math.sqrt(3 * H2)
    b_ih = jax.random.uniform(ks[4], (3 * H2,), jnp.float32, -stdv, stdv)
    b_hh = jax.random.uniform(ks[5], (3 * H2,), jnp.float32, -stdv, stdv)

    def pad_cols(w_t):                    # (in, H2) -> (in, Hg) zero pad
        return jnp.pad(w_t, ((0, 0), (0, Hg - H2)))

    def pad_vec(v):                       # (H2,) -> (Hg,)
        return jnp.pad(v, (0, Hg - H2))

    # Fused, transposed (in, out) layouts; each gate lane-padded to Hg columns.
    w_in_fused = jnp.concatenate(
        [pad_cols(w_ih[g * H2:(g + 1) * H2].T) for g in range(3)],
        axis=1)                                                   # (4H, 3*Hg)
    # Hidden weights: pad contraction rows H2 -> Hg with zeros too, so padded
    # lanes of the carried h contribute nothing.
    w_h_fused = jnp.concatenate(
        [pad_cols(jnp.pad(w_hh[g * H2:(g + 1) * H2].T,
                          ((0, Hg - H2), (0, 0)))) for g in range(3)],
        axis=1)                                                   # (Hg, 3*Hg)
    # r/z hidden biases fold into the input-side bias (they sum before the
    # sigmoid); the n-gate hidden bias stays separate (inside r * (...)).
    b_in_fused = jnp.concatenate(
        [pad_vec(b_ih[0:H2] + b_hh[0:H2]),
         pad_vec(b_ih[H2:2 * H2] + b_hh[H2:2 * H2]),
         pad_vec(b_ih[2 * H2:])])[None, :]                        # (1, 3*Hg)
    b_hn = pad_vec(b_hh[2 * H2:])[None, :]                        # (1, Hg)

    # linear_r : Linear(2*h_dim, 1) — stored as a lane-padded (1, Hg) row.
    w_r = jnp.pad(xavier_uniform(ks[6], (1, H2), gain),
                  ((0, 0), (0, Hg - H2)))                         # (1, Hg)
    stdv_r = 1.0 / math.sqrt(1.0)
    b_r = jax.random.uniform(ks[7], (1,), jnp.float32, -stdv_r, stdv_r)[None, :]

    return {
        "ent_embeds": ent_embeds, "rel_embeds": rel_embeds,
        "w_in_fused": w_in_fused, "b_in_fused": b_in_fused,
        "w_h_fused": w_h_fused, "b_hn": b_hn,
        "wr": w_r, "br": b_r,
    }


# ----------------------------- forward (glue) -------------------------------
def synthetic_aggregator(sorted_t, ent_embeds, rel_embeds, seq_len):
    # TODO(synk): aggregator_event depends on external graph_dict /
    # sentence_embeddings_dict state not part of this module; replaced with a
    # deterministic stand-in that produces the same-shaped (T, B, 4*h_dim)
    # time-major embedding sequence and per-sequence lengths.
    agg_e = jnp.mean(ent_embeds, axis=0)                         # (H,)
    agg_r = jnp.mean(rel_embeds, axis=0)                         # (H,)
    base = jnp.concatenate([agg_e, agg_r, agg_e[::-1], agg_r[::-1]])  # (4H,)
    t_scale = (1.0 + 0.05 * jnp.arange(seq_len, dtype=jnp.float32))[:, None, None]
    b_scale = (1.0 + 0.1 * sorted_t.astype(jnp.float32))[None, :, None]
    embed_seq = base[None, None, :] * t_scale * b_scale          # (T, B, 4H)
    len_non_zero = jnp.clip(sorted_t, 1, seq_len).astype(jnp.int32)[:, None]  # (B, 1)
    return embed_seq, len_non_zero


@functools.partial(jax.jit, static_argnames=("seq_len",))
def compgcn_forward(t_list, ent_memory, rel_memory, params, seq_len):
    # sorted_t, idx = t_list.sort(0, descending=True); like the PyTorch forward
    # the predictions are returned in this sorted order (idx is discarded).
    sorted_t = -jnp.sort(-t_list)
    embed_seq, lens = synthetic_aggregator(
        sorted_t, params["ent_embeds"], params["rel_embeds"], seq_len)
    # pack_padded_sequence + GRU final hidden + zero-pad + linear_r + sigmoid
    # are all handled inside the Pallas kernel (masked recurrence).
    h2 = 2 * params["ent_embeds"].shape[1]
    pred, _feat = gru_head_pallas(embed_seq, lens, params, h2)
    del ent_memory, rel_memory  # memories feed aggregator_event (see TODO above)
    return pred


# --------------------------------- main --------------------------------------
if __name__ == "__main__":
    h_dim = 32
    num_ents = 16
    num_rels = 8
    seq_len = 8
    batch = 4

    key = jax.random.PRNGKey(0)
    kp, km1, km2 = jax.random.split(key, 3)
    params = build_params(kp, h_dim, num_ents, num_rels)

    t_list = jnp.array([7, 3, 5, 2], dtype=jnp.int32)           # (batch,)
    ent_memory = jax.random.normal(km1, (num_ents, h_dim), jnp.float32)
    rel_memory = jax.random.normal(km2, (num_rels, h_dim), jnp.float32)

    pred = compgcn_forward(t_list, ent_memory, rel_memory, params, seq_len)
    pred = jax.block_until_ready(pred)
    assert pred.shape == (batch, 1)
    assert bool(jnp.all(jnp.isfinite(pred)))
    print("KERNEL_OK")
</pallas_src>

<mosaic_0001>
module attributes {stable_mosaic.version = 11 : i64} {
  func.func @gru_head_kernel(%arg0: i32, %arg1: i32, %arg2: memref<8x16x128xbf16, #tpu.memory_space<vmem>>, %arg3: memref<16x1xi32, #tpu.memory_space<vmem>>, %arg4: memref<128x384xbf16, #tpu.memory_space<vmem>>, %arg5: memref<1x384xf32, #tpu.memory_space<vmem>>, %arg6: memref<128x384xbf16, #tpu.memory_space<vmem>>, %arg7: memref<1x128xf32, #tpu.memory_space<vmem>>, %arg8: memref<1x128xf32, #tpu.memory_space<vmem>>, %arg9: memref<1x1xf32, #tpu.memory_space<vmem>>, %arg10: memref<16x1xf32, #tpu.memory_space<vmem>>, %arg11: memref<16x128xf32, #tpu.memory_space<vmem>>, %arg12: memref<8x16x384xbf16, #tpu.memory_space<vmem>>, %arg13: memref<16x128xf32, #tpu.memory_space<vmem>>) attributes {dimension_semantics = [#tpu.dimension_semantics<parallel>, #tpu.dimension_semantics<arbitrary>], iteration_bounds = array<i64: 1, 1>, scalar_prefetch = 0 : i64, scratch_operands = 2 : i64, tpu.core_type = #tpu.core_type<tc>, window_params = [{transform_indices = @transform_0, window_bounds = array<i64: 8, 16, 128>}, {transform_indices = @transform_1, window_bounds = array<i64: 16, 1>}, {pipeline_mode = #tpu.pipeline_mode<synchronous>, transform_indices = @transform_2, window_bounds = array<i64: 128, 384>}, {pipeline_mode = #tpu.pipeline_mode<synchronous>, transform_indices = @transform_3, window_bounds = array<i64: 1, 384>}, {pipeline_mode = #tpu.pipeline_mode<synchronous>, transform_indices = @transform_4, window_bounds = array<i64: 128, 384>}, {pipeline_mode = #tpu.pipeline_mode<synchronous>, transform_indices = @transform_5, window_bounds = array<i64: 1, 128>}, {pipeline_mode = #tpu.pipeline_mode<synchronous>, transform_indices = @transform_6, window_bounds = array<i64: 1, 128>}, {pipeline_mode = #tpu.pipeline_mode<synchronous>, transform_indices = @transform_7, window_bounds = array<i64: 1, 1>}, {transform_indices = @transform_8, window_bounds = array<i64: 16, 1>}, {transform_indices = @transform_9, window_bounds = array<i64: 16, 128>}]} {
    %c0_i32 = arith.constant 0 : i32
    %0 = arith.cmpi eq, %arg1, %c0_i32 : i32
    %1 = arith.extui %0 : i1 to i32
    %c0_i32_0 = arith.constant 0 : i32
    %2 = arith.cmpi ne, %1, %c0_i32_0 : i32
    scf.if %2 {
      %cst_64 = arith.constant 0.000000e+00 : f32
      %288 = vector.broadcast %cst_64 : f32 to vector<16x128xf32>
      %c0_65 = arith.constant 0 : index
      %c0_66 = arith.constant 0 : index
      %289 = vector.load %arg13[%c0_65, %c0_66] : memref<16x128xf32, #tpu.memory_space<vmem>>, vector<16x128xf32>
      tpu.vector_store %arg13[%c0_65, %c0_66], %288 {strides = array<i32>} : memref<16x128xf32, #tpu.memory_space<vmem>>, vector<16x128xf32>,
    } else {
    }
    %c0 = arith.constant 0 : index
    %c0_1 = arith.constant 0 : index
    %c0_2 = arith.constant 0 : index
    %3 = vector.load %arg2[%c0, %c0_1, %c0_2] : memref<8x16x128xbf16, #tpu.memory_space<vmem>>, vector<8x16x128xbf16>
    %4 = vector.shape_cast %3 : vector<8x16x128xbf16> to vector<128x128xbf16>
    %c0_3 = arith.constant 0 : index
    %c0_4 = arith.constant 0 : index
    %5 = vector.load %arg4[%c0_3, %c0_4] : memref<128x384xbf16, #tpu.memory_space<vmem>>, vector<128x384xbf16>
    %cst = arith.constant dense<0.000000e+00> : vector<128x384xf32>
    %6 = tpu.matmul %4, %5, %cst {dimension_numbers = #tpu.dot_dimension_numbers<[1], [0], [0], [1], [0, 0, 1, 1], [], []>} : vector<128x128xbf16>, vector<128x384xbf16>, vector<128x384xf32> -> vector<128x384xf32>
    %c0_5 = arith.constant 0 : index
    %c0_6 = arith.constant 0 : index
    %7 = vector.load %arg5[%c0_5, %c0_6] : memref<1x384xf32, #tpu.memory_space<vmem>>, vector<1x384xf32>
    %8 = vector.broadcast %7 : vector<1x384xf32> to vector<128x384xf32>
    %9 = arith.addf %6, %8 : vector<128x384xf32>
    %10 = vector.shape_cast %9 : vector<128x384xf32> to vector<8x16x384xf32>
    %11 = arith.truncf %10 : vector<8x16x384xf32> to vector<8x16x384xbf16>
    %c0_7 = arith.constant 0 : index
    %c0_8 = arith.constant 0 : index
    %c0_9 = arith.constant 0 : index
    %12 = vector.load %arg12[%c0_7, %c0_8, %c0_9] : memref<8x16x384xbf16, #tpu.memory_space<vmem>>, vector<8x16x384xbf16>
    tpu.vector_store %arg12[%c0_7, %c0_8, %c0_9], %11 {strides = array<i32>} : memref<8x16x384xbf16, #tpu.memory_space<vmem>>, vector<8x16x384xbf16>,
    %c0_10 = arith.constant 0 : index
    %c0_11 = arith.constant 0 : index
    %13 = vector.load %arg6[%c0_10, %c0_11] : memref<128x384xbf16, #tpu.memory_space<vmem>>, vector<128x384xbf16>
    %c0_12 = arith.constant 0 : index
    %c0_13 = arith.constant 0 : index
    %14 = vector.load %arg7[%c0_12, %c0_13] : memref<1x128xf32, #tpu.memory_space<vmem>>, vector<1x128xf32>
    %15 = vector.shape_cast %14 : vector<1x128xf32> to vector<1x128xf32>
    %16 = vector.broadcast %15 : vector<1x128xf32> to vector<16x128xf32>
    %c0_14 = arith.constant 0 : index
    %c0_15 = arith.constant 0 : index
    %17 = vector.load %arg3[%c0_14, %c0_15] : memref<16x1xi32, #tpu.memory_space<vmem>>, vector<16x1xi32>
    %c8_i32 = arith.constant 8 : i32
    %18 = arith.muli %arg1, %c8_i32 : i32
    %c0_16 = arith.constant 0 : index
    %c0_17 = arith.constant 0 : index
    %19 = vector.load %arg13[%c0_16, %c0_17] : memref<16x128xf32, #tpu.memory_space<vmem>>, vector<16x128xf32>
    %c0_i32_18 = arith.constant 0 : i32
    %20 = arith.index_cast %c0_i32_18 : i32 to index
    %c0_19 = arith.constant 0 : index
    %c0_20 = arith.constant 0 : index
    %21 = vector.load %arg12[%20, %c0_19, %c0_20] : memref<8x16x384xbf16, #tpu.memory_space<vmem>>, vector<1x16x384xbf16>
    %22 = vector.shape_cast %21 : vector<1x16x384xbf16> to vector<16x384xbf16>
    %23 = arith.extf %22 : vector<16x384xbf16> to vector<16x384xf32>
    %24 = arith.truncf %19 : vector<16x128xf32> to vector<16x128xbf16>
    %cst_21 = arith.constant dense<0.000000e+00> : vector<16x384xf32>
    %25 = tpu.matmul %24, %13, %cst_21 {dimension_numbers = #tpu.dot_dimension_numbers<[1], [0], [0], [1], [0, 0, 1, 1], [], []>} : vector<16x128xbf16>, vector<128x384xbf16>, vector<16x384xf32> -> vector<16x384xf32>
    %26 = vector.extract_strided_slice %23 {offsets = [0, 0], sizes = [16, 256], strides = [1, 1]} : vector<16x384xf32> to vector<16x256xf32>
    %27 = vector.extract_strided_slice %25 {offsets = [0, 0], sizes = [16, 256], strides = [1, 1]} : vector<16x384xf32> to vector<16x256xf32>
    %28 = arith.addf %26, %27 : vector<16x256xf32>
    %29 = arith.negf %28 : vector<16x256xf32>
    %30 = math.exp %29 : vector<16x256xf32>
    %cst_22 = arith.constant 1.000000e+00 : f32
    %31 = vector.broadcast %cst_22 : f32 to vector<16x256xf32>
    %32 = arith.addf %31, %30 : vector<16x256xf32>
    %33 = arith.divf %31, %32 : vector<16x256xf32>
    %34 = vector.extract_strided_slice %33 {offsets = [0, 0], sizes = [16, 128], strides = [1, 1]} : vector<16x256xf32> to vector<16x128xf32>
    %35 = vector.extract_strided_slice %33 {offsets = [0, 128], sizes = [16, 128], strides = [1, 1]} : vector<16x256xf32> to vector<16x128xf32>
    %36 = vector.extract_strided_slice %23 {offsets = [0, 256], sizes = [16, 128], strides = [1, 1]} : vector<16x384xf32> to vector<16x128xf32>
    %37 = vector.extract_strided_slice %25 {offsets = [0, 256], sizes = [16, 128], strides = [1, 1]} : vector<16x384xf32> to vector<16x128xf32>
    %38 = arith.addf %37, %16 : vector<16x128xf32>
    %39 = arith.mulf %34, %38 : vector<16x128xf32>
    %40 = arith.addf %36, %39 : vector<16x128xf32>
    %41 = math.tanh %40 : vector<16x128xf32>
    %cst_23 = arith.constant 1.000000e+00 : f32
    %42 = vector.broadcast %cst_23 : f32 to vector<16x128xf32>
    %43 = arith.subf %42, %35 : vector<16x128xf32>
    %44 = arith.mulf %43, %41 : vector<16x128xf32>
    %45 = arith.mulf %35, %19 : vector<16x128xf32>
    %46 = arith.addf %44, %45 : vector<16x128xf32>
    %47 = arith.addi %18, %c0_i32_18 : i32
    %48 = vector.broadcast %47 : i32 to vector<16x1xi32>
    %49 = arith.cmpi sgt, %17, %48 : vector<16x1xi32>
    %50 = vector.shape_cast %49 : vector<16x1xi1> to vector<16x1xi1>
    %51 = vector.broadcast %50 : vector<16x1xi1> to vector<16x128xi1>
    %52 = arith.select %51, %46, %19 : vector<16x128xi1>, vector<16x128xf32>
    %c1_i32 = arith.constant 1 : i32
    %53 = arith.index_cast %c1_i32 : i32 to index
    %c0_24 = arith.constant 0 : index
    %c0_25 = arith.constant 0 : index
    %54 = vector.load %arg12[%53, %c0_24, %c0_25] : memref<8x16x384xbf16, #tpu.memory_space<vmem>>, vector<1x16x384xbf16>
    %55 = vector.shape_cast %54 : vector<1x16x384xbf16> to vector<16x384xbf16>
    %56 = arith.extf %55 : vector<16x384xbf16> to vector<16x384xf32>
    %57 = arith.truncf %52 : vector<16x128xf32> to vector<16x128xbf16>
    %cst_26 = arith.constant dense<0.000000e+00> : vector<16x384xf32>
    %58 = tpu.matmul %57, %13, %cst_26 {dimension_numbers = #tpu.dot_dimension_numbers<[1], [0], [0], [1], [0, 0, 1, 1], [], []>} : vector<16x128xbf16>, vector<128x384xbf16>, vector<16x384xf32> -> vector<16x384xf32>
    %59 = vector.extract_strided_slice %56 {offsets = [0, 0], sizes = [16, 256], strides = [1, 1]} : vector<16x384xf32> to vector<16x256xf32>
    %60 = vector.extract_strided_slice %58 {offsets = [0, 0], sizes = [16, 256], strides = [1, 1]} : vector<16x384xf32> to vector<16x256xf32>
    %61 = arith.addf %59, %60 : vector<16x256xf32>
    %62 = arith.negf %61 : vector<16x256xf32>
    %63 = math.exp %62 : vector<16x256xf32>
    %cst_27 = arith.constant 1.000000e+00 : f32
    %64 = vector.broadcast %cst_27 : f32 to vector<16x256xf32>
    %65 = arith.addf %64, %63 : vector<16x256xf32>
    %66 = arith.divf %64, %65 : vector<16x256xf32>
    %67 = vector.extract_strided_slice %66 {offsets = [0, 0], sizes = [16, 128], strides = [1, 1]} : vector<16x256xf32> to vector<16x128xf32>
    %68 = vector.extract_strided_slice %66 {offsets = [0, 128], sizes = [16, 128], strides = [1, 1]} : vector<16x256xf32> to vector<16x128xf32>
    %69 = vector.extract_strided_slice %56 {offsets = [0, 256], sizes = [16, 128], strides = [1, 1]} : vector<16x384xf32> to vector<16x128xf32>
    %70 = vector.extract_strided_slice %58 {offsets = [0, 256], sizes = [16, 128], strides = [1, 1]} : vector<16x384xf32> to vector<16x128xf32>
    %71 = arith.addf %70, %16 : vector<16x128xf32>
    %72 = arith.mulf %67, %71 : vector<16x128xf32>
    %73 = arith.addf %69, %72 : vector<16x128xf32>
    %74 = math.tanh %73 : vector<16x128xf32>
    %cst_28 = arith.constant 1.000000e+00 : f32
    %75 = vector.broadcast %cst_28 : f32 to vector<16x128xf32>
    %76 = arith.subf %75, %68 : vector<16x128xf32>
    %77 = arith.mulf %76, %74 : vector<16x128xf32>
    %78 = arith.mulf %68, %52 : vector<16x128xf32>
    %79 = arith.addf %77, %78 : vector<16x128xf32>
    %80 = arith.addi %18, %c1_i32 : i32
    %81 = vector.broadcast %80 : i32 to vector<16x1xi32>
    %82 = arith.cmpi sgt, %17, %81 : vector<16x1xi32>
    %83 = vector.shape_cast %82 : vector<16x1xi1> to vector<16x1xi1>
    %84 = vector.broadcast %83 : vector<16x1xi1> to vector<16x128xi1>
    %85 = arith.select %84, %79, %52 : vector<16x128xi1>, vector<16x128xf32>
    %c2_i32 = arith.constant 2 : i32
    %86 = arith.index_cast %c2_i32 : i32 to index
    %c0_29 = arith.constant 0 : index
    %c0_30 = arith.constant 0 : index
    %87 = vector.load %arg12[%86, %c0_29, %c0_30] : memref<8x16x384xbf16, #tpu.memory_space<vmem>>, vector<1x16x384xbf16>
    %88 = vector.shape_cast %87 : vector<1x16x384xbf16> to vector<16x384xbf16>
    %89 = arith.extf %88 : vector<16x384xbf16> to vector<16x384xf32>
    %90 = arith.truncf %85 : vector<16x128xf32> to vector<16x128xbf16>
    %cst_31 = arith.constant dense<0.000000e+00> : vector<16x384xf32>
    %91 = tpu.matmul %90, %13, %cst_31 {dimension_numbers = #tpu.dot_dimension_numbers<[1], [0], [0], [1], [0, 0, 1, 1], [], []>} : vector<16x128xbf16>, vector<128x384xbf16>, vector<16x384xf32> -> vector<16x384xf32>
    %92 = vector.extract_strided_slice %89 {offsets = [0, 0], sizes = [16, 256], strides = [1, 1]} : vector<16x384xf32> to vector<16x256xf32>
    %93 = vector.extract_strided_slice %91 {offsets = [0, 0], sizes = [16, 256], strides = [1, 1]} : vector<16x384xf32> to vector<16x256xf32>
    %94 = arith.addf %92, %93 : vector<16x256xf32>
    %95 = arith.negf %94 : vector<16x256xf32>
    %96 = math.exp %95 : vector<16x256xf32>
    %cst_32 = arith.constant 1.000000e+00 : f32
    %97 = vector.broadcast %cst_32 : f32 to vector<16x256xf32>
    %98 = arith.addf %97, %96 : vector<16x256xf32>
    %99 = arith.divf %97, %98 : vector<16x256xf32>
    %100 = vector.extract_strided_slice %99 {offsets = [0, 0], sizes = [16, 128], strides = [1, 1]} : vector<16x256xf32> to vector<16x128xf32>
    %101 = vector.extract_strided_slice %99 {offsets = [0, 128], sizes = [16, 128], strides = [1, 1]} : vector<16x256xf32> to vector<16x128xf32>
    %102 = vector.extract_strided_slice %89 {offsets = [0, 256], sizes = [16, 128], strides = [1, 1]} : vector<16x384xf32> to vector<16x128xf32>
    %103 = vector.extract_strided_slice %91 {offsets = [0, 256], sizes = [16, 128], strides = [1, 1]} : vector<16x384xf32> to vector<16x128xf32>
    %104 = arith.addf %103, %16 : vector<16x128xf32>
    %105 = arith.mulf %100, %104 : vector<16x128xf32>
    %106 = arith.addf %102, %105 : vector<16x128xf32>
    %107 = math.tanh %106 : vector<16x128xf32>
    %cst_33 = arith.constant 1.000000e+00 : f32
    %108 = vector.broadcast %cst_33 : f32 to vector<16x128xf32>
    %109 = arith.subf %108, %101 : vector<16x128xf32>
    %110 = arith.mulf %109, %107 : vector<16x128xf32>
    %111 = arith.mulf %101, %85 : vector<16x128xf32>
    %112 = arith.addf %110, %111 : vector<16x128xf32>
    %113 = arith.addi %18, %c2_i32 : i32
    %114 = vector.broadcast %113 : i32 to vector<16x1xi32>
    %115 = arith.cmpi sgt, %17, %114 : vector<16x1xi32>
    %116 = vector.shape_cast %115 : vector<16x1xi1> to vector<16x1xi1>
    %117 = vector.broadcast %116 : vector<16x1xi1> to vector<16x128xi1>
    %118 = arith.select %117, %112, %85 : vector<16x128xi1>, vector<16x128xf32>
    %c3_i32 = arith.constant 3 : i32
    %119 = arith.index_cast %c3_i32 : i32 to index
    %c0_34 = arith.constant 0 : index
    %c0_35 = arith.constant 0 : index
    %120 = vector.load %arg12[%119, %c0_34, %c0_35] : memref<8x16x384xbf16, #tpu.memory_space<vmem>>, vector<1x16x384xbf16>
    %121 = vector.shape_cast %120 : vector<1x16x384xbf16> to vector<16x384xbf16>
    %122 = arith.extf %121 : vector<16x384xbf16> to vector<16x384xf32>
    %123 = arith.truncf %118 : vector<16x128xf32> to vector<16x128xbf16>
    %cst_36 = arith.constant dense<0.000000e+00> : vector<16x384xf32>
    %124 = tpu.matmul %123, %13, %cst_36 {dimension_numbers = #tpu.dot_dimension_numbers<[1], [0], [0], [1], [0, 0, 1, 1], [], []>} : vector<16x128xbf16>, vector<128x384xbf16>, vector<16x384xf32> -> vector<16x384xf32>
    %125 = vector.extract_strided_slice %122 {offsets = [0, 0], sizes = [16, 256], strides = [1, 1]} : vector<16x384xf32> to vector<16x256xf32>
    %126 = vector.extract_strided_slice %124 {offsets = [0, 0], sizes = [16, 256], strides = [1, 1]} : vector<16x384xf32> to vector<16x256xf32>
    %127 = arith.addf %125, %126 : vector<16x256xf32>
    %128 = arith.negf %127 : vector<16x256xf32>
    %129 = math.exp %128 : vector<16x256xf32>
    %cst_37 = arith.constant 1.000000e+00 : f32
    %130 = vector.broadcast %cst_37 : f32 to vector<16x256xf32>
    %131 = arith.addf %130, %129 : vector<16x256xf32>
    %132 = arith.divf %130, %131 : vector<16x256xf32>
    %133 = vector.extract_strided_slice %132 {offsets = [0, 0], sizes = [16, 128], strides = [1, 1]} : vector<16x256xf32> to vector<16x128xf32>
    %134 = vector.extract_strided_slice %132 {offsets = [0, 128], sizes = [16, 128], strides = [1, 1]} : vector<16x256xf32> to vector<16x128xf32>
    %135 = vector.extract_strided_slice %122 {offsets = [0, 256], sizes = [16, 128], strides = [1, 1]} : vector<16x384xf32> to vector<16x128xf32>
    %136 = vector.extract_strided_slice %124 {offsets = [0, 256], sizes = [16, 128], strides = [1, 1]} : vector<16x384xf32> to vector<16x128xf32>
    %137 = arith.addf %136, %16 : vector<16x128xf32>
    %138 = arith.mulf %133, %137 : vector<16x128xf32>
    %139 = arith.addf %135, %138 : vector<16x128xf32>
    %140 = math.tanh %139 : vector<16x128xf32>
    %cst_38 = arith.constant 1.000000e+00 : f32
    %141 = vector.broadcast %cst_38 : f32 to vector<16x128xf32>
    %142 = arith.subf %141, %134 : vector<16x128xf32>
    %143 = arith.mulf %142, %140 : vector<16x128xf32>
    %144 = arith.mulf %134, %118 : vector<16x128xf32>
    %145 = arith.addf %143, %144 : vector<16x128xf32>
    %146 = arith.addi %18, %c3_i32 : i32
    %147 = vector.broadcast %146 : i32 to vector<16x1xi32>
    %148 = arith.cmpi sgt, %17, %147 : vector<16x1xi32>
    %149 = vector.shape_cast %148 : vector<16x1xi1> to vector<16x1xi1>
    %150 = vector.broadcast %149 : vector<16x1xi1> to vector<16x128xi1>
    %151 = arith.select %150, %145, %118 : vector<16x128xi1>, vector<16x128xf32>
    %c4_i32 = arith.constant 4 : i32
    %152 = arith.index_cast %c4_i32 : i32 to index
    %c0_39 = arith.constant 0 : index
    %c0_40 = arith.constant 0 : index
    %153 = vector.load %arg12[%152, %c0_39, %c0_40] : memref<8x16x384xbf16, #tpu.memory_space<vmem>>, vector<1x16x384xbf16>
    %154 = vector.shape_cast %153 : vector<1x16x384xbf16> to vector<16x384xbf16>
    %155 = arith.extf %154 : vector<16x384xbf16> to vector<16x384xf32>
    %156 = arith.truncf %151 : vector<16x128xf32> to vector<16x128xbf16>
    %cst_41 = arith.constant dense<0.000000e+00> : vector<16x384xf32>
    %157 = tpu.matmul %156, %13, %cst_41 {dimension_numbers = #tpu.dot_dimension_numbers<[1], [0], [0], [1], [0, 0, 1, 1], [], []>} : vector<16x128xbf16>, vector<128x384xbf16>, vector<16x384xf32> -> vector<16x384xf32>
    %158 = vector.extract_strided_slice %155 {offsets = [0, 0], sizes = [16, 256], strides = [1, 1]} : vector<16x384xf32> to vector<16x256xf32>
    %159 = vector.extract_strided_slice %157 {offsets = [0, 0], sizes = [16, 256], strides = [1, 1]} : vector<16x384xf32> to vector<16x256xf32>
    %160 = arith.addf %158, %159 : vector<16x256xf32>
    %161 = arith.negf %160 : vector<16x256xf32>
    %162 = math.exp %161 : vector<16x256xf32>
    %cst_42 = arith.constant 1.000000e+00 : f32
    %163 = vector.broadcast %cst_42 : f32 to vector<16x256xf32>
    %164 = arith.addf %163, %162 : vector<16x256xf32>
    %165 = arith.divf %163, %164 : vector<16x256xf32>
    %166 = vector.extract_strided_slice %165 {offsets = [0, 0], sizes = [16, 128], strides = [1, 1]} : vector<16x256xf32> to vector<16x128xf32>
    %167 = vector.extract_strided_slice %165 {offsets = [0, 128], sizes = [16, 128], strides = [1, 1]} : vector<16x256xf32> to vector<16x128xf32>
    %168 = vector.extract_strided_slice %155 {offsets = [0, 256], sizes = [16, 128], strides = [1, 1]} : vector<16x384xf32> to vector<16x128xf32>
    %169 = vector.extract_strided_slice %157 {offsets = [0, 256], sizes = [16, 128], strides = [1, 1]} : vector<16x384xf32> to vector<16x128xf32>
    %170 = arith.addf %169, %16 : vector<16x128xf32>
    %171 = arith.mulf %166, %170 : vector<16x128xf32>
    %172 = arith.addf %168, %171 : vector<16x128xf32>
    %173 = math.tanh %172 : vector<16x128xf32>
    %cst_43 = arith.constant 1.000000e+00 : f32
    %174 = vector.broadcast %cst_43 : f32 to vector<16x128xf32>
    %175 = arith.subf %174, %167 : vector<16x128xf32>
    %176 = arith.mulf %175, %173 : vector<16x128xf32>
    %177 = arith.mulf %167, %151 : vector<16x128xf32>
    %178 = arith.addf %176, %177 : vector<16x128xf32>
    %179 = arith.addi %18, %c4_i32 : i32
    %180 = vector.broadcast %179 : i32 to vector<16x1xi32>
    %181 = arith.cmpi sgt, %17, %180 : vector<16x1xi32>
    %182 = vector.shape_cast %181 : vector<16x1xi1> to vector<16x1xi1>
    %183 = vector.broadcast %182 : vector<16x1xi1> to vector<16x128xi1>
    %184 = arith.select %183, %178, %151 : vector<16x128xi1>, vector<16x128xf32>
    %c5_i32 = arith.constant 5 : i32
    %185 = arith.index_cast %c5_i32 : i32 to index
    %c0_44 = arith.constant 0 : index
    %c0_45 = arith.constant 0 : index
    %186 = vector.load %arg12[%185, %c0_44, %c0_45] : memref<8x16x384xbf16, #tpu.memory_space<vmem>>, vector<1x16x384xbf16>
    %187 = vector.shape_cast %186 : vector<1x16x384xbf16> to vector<16x384xbf16>
    %188 = arith.extf %187 : vector<16x384xbf16> to vector<16x384xf32>
    %189 = arith.truncf %184 : vector<16x128xf32> to vector<16x128xbf16>
    %cst_46 = arith.constant dense<0.000000e+00> : vector<16x384xf32>
    %190 = tpu.matmul %189, %13, %cst_46 {dimension_numbers = #tpu.dot_dimension_numbers<[1], [0], [0], [1], [0, 0, 1, 1], [], []>} : vector<16x128xbf16>, vector<128x384xbf16>, vector<16x384xf32> -> vector<16x384xf32>
    %191 = vector.extract_strided_slice %188 {offsets = [0, 0], sizes = [16, 256], strides = [1, 1]} : vector<16x384xf32> to vector<16x256xf32>
    %192 = vector.extract_strided_slice %190 {offsets = [0, 0], sizes = [16, 256], strides = [1, 1]} : vector<16x384xf32> to vector<16x256xf32>
    %193 = arith.addf %191, %192 : vector<16x256xf32>
    %194 = arith.negf %193 : vector<16x256xf32>
    %195 = math.exp %194 : vector<16x256xf32>
    %cst_47 = arith.constant 1.000000e+00 : f32
    %196 = vector.broadcast %cst_47 : f32 to vector<16x256xf32>
    %197 = arith.addf %196, %195 : vector<16x256xf32>
    %198 = arith.divf %196, %197 : vector<16x256xf32>
    %199 = vector.extract_strided_slice %198 {offsets = [0, 0], sizes = [16, 128], strides = [1, 1]} : vector<16x256xf32> to vector<16x128xf32>
    %200 = vector.extract_strided_slice %198 {offsets = [0, 128], sizes = [16, 128], strides = [1, 1]} : vector<16x256xf32> to vector<16x128xf32>
    %201 = vector.extract_strided_slice %188 {offsets = [0, 256], sizes = [16, 128], strides = [1, 1]} : vector<16x384xf32> to vector<16x128xf32>
    %202 = vector.extract_strided_slice %190 {offsets = [0, 256], sizes = [16, 128], strides = [1, 1]} : vector<16x384xf32> to vector<16x128xf32>
    %203 = arith.addf %202, %16 : vector<16x128xf32>
    %204 = arith.mulf %199, %203 : vector<16x128xf32>
    %205 = arith.addf %201, %204 : vector<16x128xf32>
    %206 = math.tanh %205 : vector<16x128xf32>
    %cst_48 = arith.constant 1.000000e+00 : f32
    %207 = vector.broadcast %cst_48 : f32 to vector<16x128xf32>
    %208 = arith.subf %207, %200 : vector<16x128xf32>
    %209 = arith.mulf %208, %206 : vector<16x128xf32>
    %210 = arith.mulf %200, %184 : vector<16x128xf32>
    %211 = arith.addf %209, %210 : vector<16x128xf32>
    %212 = arith.addi %18, %c5_i32 : i32
    %213 = vector.broadcast %212 : i32 to vector<16x1xi32>
    %214 = arith.cmpi sgt, %17, %213 : vector<16x1xi32>
    %215 = vector.shape_cast %214 : vector<16x1xi1> to vector<16x1xi1>
    %216 = vector.broadcast %215 : vector<16x1xi1> to vector<16x128xi1>
    %217 = arith.select %216, %211, %184 : vector<16x128xi1>, vector<16x128xf32>
    %c6_i32 = arith.constant 6 : i32
    %218 = arith.index_cast %c6_i32 : i32 to index
    %c0_49 = arith.constant 0 : index
    %c0_50 = arith.constant 0 : index
    %219 = vector.load %arg12[%218, %c0_49, %c0_50] : memref<8x16x384xbf16, #tpu.memory_space<vmem>>, vector<1x16x384xbf16>
    %220 = vector.shape_cast %219 : vector<1x16x384xbf16> to vector<16x384xbf16>
    %221 = arith.extf %220 : vector<16x384xbf16> to vector<16x384xf32>
    %222 = arith.truncf %217 : vector<16x128xf32> to vector<16x128xbf16>
    %cst_51 = arith.constant dense<0.000000e+00> : vector<16x384xf32>
    %223 = tpu.matmul %222, %13, %cst_51 {dimension_numbers = #tpu.dot_dimension_numbers<[1], [0], [0], [1], [0, 0, 1, 1], [], []>} : vector<16x128xbf16>, vector<128x384xbf16>, vector<16x384xf32> -> vector<16x384xf32>
    %224 = vector.extract_strided_slice %221 {offsets = [0, 0], sizes = [16, 256], strides = [1, 1]} : vector<16x384xf32> to vector<16x256xf32>
    %225 = vector.extract_strided_slice %223 {offsets = [0, 0], sizes = [16, 256], strides = [1, 1]} : vector<16x384xf32> to vector<16x256xf32>
    %226 = arith.addf %224, %225 : vector<16x256xf32>
    %227 = arith.negf %226 : vector<16x256xf32>
    %228 = math.exp %227 : vector<16x256xf32>
    %cst_52 = arith.constant 1.000000e+00 : f32
    %229 = vector.broadcast %cst_52 : f32 to vector<16x256xf32>
    %230 = arith.addf %229, %228 : vector<16x256xf32>
    %231 = arith.divf %229, %230 : vector<16x256xf32>
    %232 = vector.extract_strided_slice %231 {offsets = [0, 0], sizes = [16, 128], strides = [1, 1]} : vector<16x256xf32> to vector<16x128xf32>
    %233 = vector.extract_strided_slice %231 {offsets = [0, 128], sizes = [16, 128], strides = [1, 1]} : vector<16x256xf32> to vector<16x128xf32>
    %234 = vector.extract_strided_slice %221 {offsets = [0, 256], sizes = [16, 128], strides = [1, 1]} : vector<16x384xf32> to vector<16x128xf32>
    %235 = vector.extract_strided_slice %223 {offsets = [0, 256], sizes = [16, 128], strides = [1, 1]} : vector<16x384xf32> to vector<16x128xf32>
    %236 = arith.addf %235, %16 : vector<16x128xf32>
    %237 = arith.mulf %232, %236 : vector<16x128xf32>
    %238 = arith.addf %234, %237 : vector<16x128xf32>
    %239 = math.tanh %238 : vector<16x128xf32>
    %cst_53 = arith.constant 1.000000e+00 : f32
    %240 = vector.broadcast %cst_53 : f32 to vector<16x128xf32>
    %241 = arith.subf %240, %233 : vector<16x128xf32>
    %242 = arith.mulf %241, %239 : vector<16x128xf32>
    %243 = arith.mulf %233, %217 : vector<16x128xf32>
    %244 = arith.addf %242, %243 : vector<16x128xf32>
    %245 = arith.addi %18, %c6_i32 : i32
    %246 = vector.broadcast %245 : i32 to vector<16x1xi32>
    %247 = arith.cmpi sgt, %17, %246 : vector<16x1xi32>
    %248 = vector.shape_cast %247 : vector<16x1xi1> to vector<16x1xi1>
    %249 = vector.broadcast %248 : vector<16x1xi1> to vector<16x128xi1>
    %250 = arith.select %249, %244, %217 : vector<16x128xi1>, vector<16x128xf32>
    %c7_i32 = arith.constant 7 : i32
    %251 = arith.index_cast %c7_i32 : i32 to index
    %c0_54 = arith.constant 0 : index
    %c0_55 = arith.constant 0 : index
    %252 = vector.load %arg12[%251, %c0_54, %c0_55] : memref<8x16x384xbf16, #tpu.memory_space<vmem>>, vector<1x16x384xbf16>
    %253 = vector.shape_cast %252 : vector<1x16x384xbf16> to vector<16x384xbf16>
    %254 = arith.extf %253 : vector<16x384xbf16> to vector<16x384xf32>
    %255 = arith.truncf %250 : vector<16x128xf32> to vector<16x128xbf16>
    %cst_56 = arith.constant dense<0.000000e+00> : vector<16x384xf32>
    %256 = tpu.matmul %255, %13, %cst_56 {dimension_numbers = #tpu.dot_dimension_numbers<[1], [0], [0], [1], [0, 0, 1, 1], [], []>} : vector<16x128xbf16>, vector<128x384xbf16>, vector<16x384xf32> -> vector<16x384xf32>
    %257 = vector.extract_strided_slice %254 {offsets = [0, 0], sizes = [16, 256], strides = [1, 1]} : vector<16x384xf32> to vector<16x256xf32>
    %258 = vector.extract_strided_slice %256 {offsets = [0, 0], sizes = [16, 256], strides = [1, 1]} : vector<16x384xf32> to vector<16x256xf32>
    %259 = arith.addf %257, %258 : vector<16x256xf32>
    %260 = arith.negf %259 : vector<16x256xf32>
    %261 = math.exp %260 : vector<16x256xf32>
    %cst_57 = arith.constant 1.000000e+00 : f32
    %262 = vector.broadcast %cst_57 : f32 to vector<16x256xf32>
    %263 = arith.addf %262, %261 : vector<16x256xf32>
    %264 = arith.divf %262, %263 : vector<16x256xf32>
    %265 = vector.extract_strided_slice %264 {offsets = [0, 0], sizes = [16, 128], strides = [1, 1]} : vector<16x256xf32> to vector<16x128xf32>
    %266 = vector.extract_strided_slice %264 {offsets = [0, 128], sizes = [16, 128], strides = [1, 1]} : vector<16x256xf32> to vector<16x128xf32>
    %267 = vector.extract_strided_slice %254 {offsets = [0, 256], sizes = [16, 128], strides = [1, 1]} : vector<16x384xf32> to vector<16x128xf32>
    %268 = vector.extract_strided_slice %256 {offsets = [0, 256], sizes = [16, 128], strides = [1, 1]} : vector<16x384xf32> to vector<16x128xf32>
    %269 = arith.addf %268, %16 : vector<16x128xf32>
    %270 = arith.mulf %265, %269 : vector<16x128xf32>
    %271 = arith.addf %267, %270 : vector<16x128xf32>
    %272 = math.tanh %271 : vector<16x128xf32>
    %cst_58 = arith.constant 1.000000e+00 : f32
    %273 = vector.broadcast %cst_58 : f32 to vector<16x128xf32>
    %274 = arith.subf %273, %266 : vector<16x128xf32>
    %275 = arith.mulf %274, %272 : vector<16x128xf32>
    %276 = arith.mulf %266, %250 : vector<16x128xf32>
    %277 = arith.addf %275, %276 : vector<16x128xf32>
    %278 = arith.addi %18, %c7_i32 : i32
    %279 = vector.broadcast %278 : i32 to vector<16x1xi32>
    %280 = arith.cmpi sgt, %17, %279 : vector<16x1xi32>
    %281 = vector.shape_cast %280 : vector<16x1xi1> to vector<16x1xi1>
    %282 = vector.broadcast %281 : vector<16x1xi1> to vector<16x128xi1>
    %283 = arith.select %282, %277, %250 : vector<16x128xi1>, vector<16x128xf32>
    %c8_i32_59 = arith.constant 8 : i32
    %c0_60 = arith.constant 0 : index
    %c0_61 = arith.constant 0 : index
    %284 = vector.load %arg13[%c0_60, %c0_61] : memref<16x128xf32, #tpu.memory_space<vmem>>, vector<16x128xf32>
    tpu.vector_store %arg13[%c0_60, %c0_61], %283 {strides = array<i32>} : memref<16x128xf32, #tpu.memory_space<vmem>>, vector<16x128xf32>,
    %c0_i32_62 = arith.constant 0 : i32
    %285 = arith.cmpi eq, %arg1, %c0_i32_62 : i32
    %286 = arith.extui %285 : i1 to i32
    %c0_i32_63 = arith.constant 0 : i32
    %287 = arith.cmpi ne, %286, %c0_i32_63 : i32
    scf.if %287 {
      %c0_64 = arith.constant 0 : index
      %c0_65 = arith.constant 0 : index
      %288 = vector.load %arg11[%c0_64, %c0_65] : memref<16x128xf32, #tpu.memory_space<vmem>>, vector<16x128xf32>
      tpu.vector_store %arg11[%c0_64, %c0_65], %283 {strides = array<i32>} : memref<16x128xf32, #tpu.memory_space<vmem>>, vector<16x128xf32>,
      %c0_66 = arith.constant 0 : index
      %c0_67 = arith.constant 0 : index
      %289 = vector.load %arg8[%c0_66, %c0_67] : memref<1x128xf32, #tpu.memory_space<vmem>>, vector<1x128xf32>
      %290 = vector.broadcast %289 : vector<1x128xf32> to vector<16x128xf32>
      %291 = arith.mulf %283, %290 : vector<16x128xf32>
      %cst_68 = arith.constant dense<0.000000e+00> : vector<16xf32>
      %292 = vector.multi_reduction <add>, %291, %cst_68 [1] : vector<16x128xf32> to vector<16xf32>
      %293 = vector.shape_cast %292 : vector<16xf32> to vector<16x1xf32>
      %c0_69 = arith.constant 0 : index
      %c0_70 = arith.constant 0 : index
      %294 = vector.load %arg9[%c0_69, %c0_70] : memref<1x1xf32, #tpu.memory_space<vmem>>, vector<1x1xf32>
      %295 = vector.broadcast %294 : vector<1x1xf32> to vector<16x1xf32>
      %296 = arith.addf %293, %295 : vector<16x1xf32>
      %297 = arith.negf %296 : vector<16x1xf32>
      %298 = math.exp %297 : vector<16x1xf32>
      %cst_71 = arith.constant 1.000000e+00 : f32
      %299 = vector.broadcast %cst_71 : f32 to vector<16x1xf32>
      %300 = arith.addf %299, %298 : vector<16x1xf32>
      %301 = arith.divf %299, %300 : vector<16x1xf32>
      %c0_72 = arith.constant 0 : index
      %c0_73 = arith.constant 0 : index
      %302 = vector.load %arg10[%c0_72, %c0_73] : memref<16x1xf32, #tpu.memory_space<vmem>>, vector<16x1xf32>
      tpu.vector_store %arg10[%c0_72, %c0_73], %301 {strides = array<i32>} : memref<16x1xf32, #tpu.memory_space<vmem>>, vector<16x1xf32>,
    } else {
    }
    return
  }
  func.func @transform_0(%arg0: i32, %arg1: i32) -> (i32, i32, i32) {
    %c0_i32 = arith.constant 0 : i32
    %c0_i32_0 = arith.constant 0 : i32
    return %arg1, %arg0, %c0_i32 : i32, i32, i32
  }
  func.func @transform_1(%arg0: i32, %arg1: i32) -> (i32, i32) {
    %c0_i32 = arith.constant 0 : i32
    %c0_i32_0 = arith.constant 0 : i32
    return %arg0, %c0_i32 : i32, i32
  }
  func.func @transform_2(%arg0: i32, %arg1: i32) -> (i32, i32) {
    %c0_i32 = arith.constant 0 : i32
    %c0_i32_0 = arith.constant 0 : i32
    %c0_i32_1 = arith.constant 0 : i32
    return %c0_i32, %c0_i32_0 : i32, i32
  }
  func.func @transform_3(%arg0: i32, %arg1: i32) -> (i32, i32) {
    %c0_i32 = arith.constant 0 : i32
    %c0_i32_0 = arith.constant 0 : i32
    %c0_i32_1 = arith.constant 0 : i32
    return %c0_i32, %c0_i32_0 : i32, i32
  }
  func.func @transform_4(%arg0: i32, %arg1: i32) -> (i32, i32) {
    %c0_i32 = arith.constant 0 : i32
    %c0_i32_0 = arith.constant 0 : i32
    %c0_i32_1 = arith.constant 0 : i32
    return %c0_i32, %c0_i32_0 : i32, i32
  }
  func.func @transform_5(%arg0: i32, %arg1: i32) -> (i32, i32) {
    %c0_i32 = arith.constant 0 : i32
    %c0_i32_0 = arith.constant 0 : i32
    %c0_i32_1 = arith.constant 0 : i32
    return %c0_i32, %c0_i32_0 : i32, i32
  }
  func.func @transform_6(%arg0: i32, %arg1: i32) -> (i32, i32) {
    %c0_i32 = arith.constant 0 : i32
    %c0_i32_0 = arith.constant 0 : i32
    %c0_i32_1 = arith.constant 0 : i32
    return %c0_i32, %c0_i32_0 : i32, i32
  }
  func.func @transform_7(%arg0: i32, %arg1: i32) -> (i32, i32) {
    %c0_i32 = arith.constant 0 : i32
    %c0_i32_0 = arith.constant 0 : i32
    %c0_i32_1 = arith.constant 0 : i32
    return %c0_i32, %c0_i32_0 : i32, i32
  }
  func.func @transform_8(%arg0: i32, %arg1: i32) -> (i32, i32) {
    %c0_i32 = arith.constant 0 : i32
    %c0_i32_0 = arith.constant 0 : i32
    return %arg0, %c0_i32 : i32, i32
  }
  func.func @transform_9(%arg0: i32, %arg1: i32) -> (i32, i32) {
    %c0_i32 = arith.constant 0 : i32
    %c0_i32_0 = arith.constant 0 : i32
    return %arg0, %c0_i32 : i32, i32
  }
}

</mosaic_0001>

<bundles_post_ra>
// kernel: reverse.1
= control target key start
LH: loop header
LB: loop body
LE: loop exit
PB: predicated region body
PF: predicated region fallthrough
CT: control target
= control target key end

     0   :  { %v2_v0 = vlaneseq  ;;  %s123_s0 = inlined_call_operand.vmem [shape: f32[32], index: 0, kind: input, shape index: {}]   ;;  %s124_s1 = inlined_call_operand.vmem [shape: f32[32], index: 1, kind: output, shape index: {}]  }
   0x2   :  { %v3_v1 = vsub.s32 31, %v2_v0 }
   0x4   :  { %4 = vset.pattern.permute.xlu0 %v3_v1 }
   0x5   :  { %v43_v2 = vld [vmem:[#allocation1] sm:$0x1]  ;;  %v21_v3 = vld [vmem:[%s123_s0] sm:$0x1]  ;;  %v58_v10 = vshrl.u32 %v2_v0, 7 }
   0x6   :  { %44 = vst [vmem:[#allocation0] sm:$0x1] %v43_v2  ;;  %22 = vst [vmem:[#allocation1 + $0x1] sm:$0x1] %v21_v3 }
   0x7   :  { %vm59_vm0 = vcmp.lt.s32.totalorder %v58_v10, 1 }
   0xd   :  { %v46_v4 = vld [vmem:[#allocation0 + $0x7] ss:$-1 sm:$0xff]  ;;  %v40_v5 = vld [vmem:[#allocation1 + $0x1] sm:$0x1] }
   0xe   :  { %v47_v6 = vrot.slane %v46_v4, 7  ;;  %42 = vst [vmem:[#allocation0 + $0x8] sm:$0x1] %v40_v5 }
  0x10   :  { %48 = vperm.xlu0 %4, %v47_v6  }
  0x15   :  { %v53_v7 = vld [vmem:[#allocation0 + $0xf] ss:$-1 sm:$0xff] }
  0x16   :  { %v54_v8 = vrot.slane %v53_v7, 7 }
  0x18   :  { %55 = vperm.xlu0 %4, %v54_v8  }
  0x8f   :  { %v49_v9 = vpop.permute.xlu0 %48 }
  0x90   :  { %50 = vst [vmem:[#allocation2] sm:$0xff] %v49_v9 }
  0x97   :  { %v56_v11 = vpop.permute.xlu0 %55 }
  0x98   :  { %60 = vst.msk [vmem:[#allocation2] sm:$0xff] %vm59_vm0, %v56_v11 }
  0x9f   :  { %v64_v12 = vld [vmem:[#allocation2] sm:$0x1] }
  0xa0   :  { %66 = vst [vmem:[#allocation3] sm:$0x1] %v64_v12 }
  0xa7   :  { %v82_v13 = vld [vmem:[#allocation3] sm:$0x1] }
  0xa8   :  { %83 = vst [vmem:[%s124_s1] sm:$0x1] %v82_v13 }

// kernel: neg.2
= control target key start
LH: loop header
LB: loop body
LE: loop exit
PB: predicated region body
PF: predicated region fallthrough
CT: control target
= control target key end

     0   :  { %s24_s0 = inlined_call_operand.vmem [shape: s32[4], index: 0, kind: input, shape index: {}]   ;;  %s25_s1 = inlined_call_operand.vmem [shape: s32[4], index: 1, kind: output, shape index: {}]  }
   0x1   :  { %v2_v0 = vld [vmem:[%s24_s0] sm:$0x1] }
   0x2   :  { %v5_v1 = vsub.s32 0, %v2_v0 }
   0x4   :  { %7 = vst [vmem:[%s25_s1] sm:$0x1] %v5_v1 }

// kernel: compgcn_forward.1
= control target key start
LH: loop header
LB: loop body
LE: loop exit
PB: predicated region body
PF: predicated region fallthrough
CT: control target
= control target key end

     0   :  { %s3713_s0 = inlined_call_operand.vmem [shape: bf16[8,16,128], index: 0, kind: input, shape index: {}]   ;;  %s3714_s1 = inlined_call_operand.vmem [shape: s32[16,1], index: 1, kind: input, shape index: {}]   ;;  %s3715_s2 = inlined_call_operand.vmem [shape: bf16[128,384], index: 2, kind: input, shape index: {}]   ;;  %s3716_s3 = inlined_call_operand.vmem [shape: f32[1,384], index: 3, kind: input, shape index: {}]   ;;  %s3717_s4 = inlined_call_operand.vmem [shape: bf16[128,384], index: 4, kind: input, shape index: {}]   ;;  %s3718_s5 = inlined_call_operand.vmem [shape: f32[1,128], index: 5, kind: input, shape index: {}]   ;;  %s3719_s6 = inlined_call_operand.vmem [shape: f32[1,128], index: 6, kind: input, shape index: {}]   ;;  %s3720_s7 = inlined_call_operand.<no memory space> [shape: f32[1,1], index: 7, kind: input, shape index: {}]   ;;  %s3721_s8 = inlined_call_operand.vmem [shape: f32[16,1], index: 8, kind: output, shape index: {0}]   ;;  %s3722_s9 = inlined_call_operand.hbm [shape: f32[16,128], index: 9, kind: output, shape index: {1}]  }
   0x1   :  { %v15_v0 = vstv %s3720_s7 }
   0x2   :  { %16 = vst [vmem:[#allocation4] sm:$0x1] %v15_v0 }
   0x3   :  { %v2402_v1 = vld [vmem:[%s3715_s2 + $0x4] ss:$12 sps:$4 sm:$0xff]   ;;  %v2404_v2 = vld [vmem:[%s3715_s2 + $0x8] ss:$12 sps:$4 sm:$0xff]   ;;  %v3723_v3 = vmov 0   ;;  %v3725_v31 = vmov 0.0  }
   0x4   :  { %314 = vmatprep.mubr.bf16.mxu0 %v3723_v3  ;;  %2400 = vset.pattern.permute.xlu0 %v3723_v3  ;;  %v2405_v4 = vld [vmem:[%s3715_s2] ss:$12 sps:$4 sm:$0xff]   ;;  %v2406_v5 = vld [vmem:[%s3715_s2 + $0x1c] ss:$12 sps:$4 sm:$0xff]   ;;  %v2409_v7 = vld [vmem:[%s3715_s2 + $0x18] ss:$12 sps:$4 sm:$0xff]  }
   0x5   :  { %282 = vmatprep.subr.bf16.mxu0 %v2402_v1  ;;  %2401 = vset.pattern.permute.xlu1 %v3723_v3  ;;  %v2408_v6 = vld [vmem:[%s3715_s2 + $0x20] ss:$12 sps:$4 sm:$0xff]   ;;  %v2412_v9 = vld [vmem:[%s3715_s2 + $0x38] ss:$12 sps:$4 sm:$0xff]   ;;  %v2413_v10 = vld [vmem:[%s3715_s2 + $0x30] ss:$12 sps:$4 sm:$0xff]  }
   0x6   :  { %2201 = vmatprep.subr.bf16.mxu1 %v2404_v2  ;;  %283 = vmatpush1.bf16.msra.mxu0 %v2405_v4  ;;  %v2410_v8 = vld [vmem:[%s3715_s2 + $0x34] ss:$12 sps:$4 sm:$0xff]   ;;  %v2414_v11 = vld [vmem:[%s3715_s2 + $0x4c] ss:$12 sps:$4 sm:$0xff]   ;;  %v2416_v12 = vld [vmem:[%s3715_s2 + $0x50] ss:$12 sps:$4 sm:$0xff]  }
   0x7   :  { %2202 = vmatpush3.bf16.msra.mxu1 %v2404_v2  ;;  %284 = vmatprep.subr.bf16.mxu0 %v2406_v5  ;;  %v2417_v13 = vld [vmem:[%s3715_s2 + $0x48] ss:$12 sps:$4 sm:$0xff]   ;;  %v2418_v14 = vld [vmem:[%s3715_s2 + $0x64] ss:$12 sps:$4 sm:$0xff]   ;;  %v2421_v16 = vld [vmem:[%s3715_s2 + $0x60] ss:$12 sps:$4 sm:$0xff]  }
   0x8   :  { %2203 = vmatprep.subr.bf16.mxu1 %v2408_v6  ;;  %v2420_v15 = vld [vmem:[%s3715_s2 + $0x68] ss:$12 sps:$4 sm:$0xff]   ;;  %v2424_v18 = vld [vmem:[%s3715_s2 + $0x80] ss:$12 sps:$4 sm:$0xff]   ;;  %v2425_v20 = vld [vmem:[%s3715_s2 + $0x78] ss:$12 sps:$4 sm:$0xff]  }
   0x9   :  { %v2422_v17 = vld [vmem:[%s3715_s2 + $0x7c] ss:$12 sps:$4 sm:$0xff]   ;;  %v2434_v19 = vld [vmem:[%s3713_s0] sm:$0xff]   ;;  %v2430_v24 = vld [vmem:[%s3715_s2 + $0xac] ss:$12 sps:$4 sm:$0xff]  }
   0xa   :  { %285 = vmatpush1.bf16.msra.mxu0 %v2409_v7  ;;  %v2426_v21 = vld [vmem:[%s3715_s2 + $0x94] ss:$12 sps:$4 sm:$0xff]   ;;  %v2428_v22 = vld [vmem:[%s3715_s2 + $0x98] ss:$12 sps:$4 sm:$0xff]   ;;  %2217 = vmatprep.mubr.bf16.mxu1 %v2434_v19  ;;  %v2429_v23 = vld [vmem:[%s3715_s2 + $0x90] ss:$12 sps:$4 sm:$0xff]  }
   0xb   :  { %2204 = vmatpush3.bf16.msra.mxu1 %v2408_v6  ;;  %286 = vmatprep.subr.bf16.mxu0 %v2410_v8  ;;  %v2432_v25 = vld [vmem:[%s3715_s2 + $0xb0] ss:$12 sps:$4 sm:$0xff]   ;;  %v2433_v26 = vld [vmem:[%s3715_s2 + $0xa8] ss:$12 sps:$4 sm:$0xff]   ;;  %v2840_v29 = vld [vmem:[%s3717_s4] ss:$12 sps:$4 sm:$0xff]  }
   0xc   :  { %2205 = vmatprep.subr.bf16.mxu1 %v2412_v9  ;;  %v2832_v27 = vld [vmem:[%s3717_s4 + $0x4] ss:$12 sps:$4 sm:$0xff]   ;;  %v2435_v28 = vld [vmem:[%s3713_s0 + $0x8] sm:$0xff]   ;;  %v2874_v36 = vld [vmem:[%s3717_s4 + $0x34] ss:$12 sps:$4 sm:$0xff]  }
   0xd   :  { %v2845_v30 = vld [vmem:[%s3717_s4 + $0x8] ss:$12 sps:$4 sm:$0xff]   ;;  %v2860_v34 = vld [vmem:[%s3717_s4 + $0x18] ss:$12 sps:$4 sm:$0xff]   ;;  %v2867_v35 = vld [vmem:[%s3717_s4 + $0x20] ss:$12 sps:$4 sm:$0xff]  }
   0xe   :  { %287 = vmatpush1.bf16.msra.mxu0 %v2413_v10  ;;  %v2852_v32 = vld [vmem:[%s3717_s4 + $0x1c] ss:$12 sps:$4 sm:$0xff]   ;;  %v2443_v33 = vld [vmem:[%s3713_s0 + $0x10] sm:$0xff]   ;;  %v2890_v39 = vld [vmem:[%s3717_s4 + $0x4c] ss:$12 sps:$4 sm:$0xff]  }
   0xf   :  { %2206 = vmatpush3.bf16.msra.mxu1 %v2412_v9  ;;  %288 = vmatprep.subr.bf16.mxu0 %v2414_v11  ;;  %v2444_v37 = vld [vmem:[%s3713_s0 + $0x18] sm:$0xff]   ;;  %v2896_v40 = vld [vmem:[%s3713_s0 + $0x20] sm:$0xff]   ;;  %v2908_v42 = vld [vmem:[%s3717_s4 + $0x48] ss:$12 sps:$4 sm:$0xff]  }
  0x10   :  { %2207 = vmatprep.subr.bf16.mxu1 %v2416_v12  ;;  %v2883_v38 = vld [vmem:[%s3717_s4 + $0x30] ss:$12 sps:$4 sm:$0xff]   ;;  %v2902_v41 = vld [vmem:[%s3717_s4 + $0x38] ss:$12 sps:$4 sm:$0xff]   ;;  %v2926_v45 = vld [vmem:[%s3714_s1 + $0x8] sm:$0xff] }
  0x11   :  { %v2916_v43 = vld [vmem:[%s3717_s4 + $0x64] ss:$12 sps:$4 sm:$0xff]   ;;  %v2938_v47 = vld [vmem:[%s3713_s0 + $0x28] sm:$0xff]  }
  0x12   :  { %289 = vmatpush1.bf16.msra.mxu0 %v2417_v13  ;;  %v2921_v44 = vld [vmem:[%s3714_s1] sm:$0xff]  ;;  %v2932_v46 = vld [vmem:[%s3717_s4 + $0x50] ss:$12 sps:$4 sm:$0xff]  }
  0x13   :  { %2208 = vmatpush3.bf16.msra.mxu1 %v2416_v12  ;;  %290 = vmatprep.subr.bf16.mxu0 %v2418_v14  ;;  %vm851_vm0 = vcmp.gt.s32.totalorder %v2921_v44, 0 }
  0x14   :  { %2209 = vmatprep.subr.bf16.mxu1 %v2420_v15  ;;  %v853_v48 = vsel %vm851_vm0, 1, %v3723_v3 }
  0x16   :  { %291 = vmatpush1.bf16.msra.mxu0 %v2421_v16 }
  0x17   :  { %2210 = vmatpush3.bf16.msra.mxu1 %v2420_v15  ;;  %292 = vmatprep.subr.bf16.mxu0 %v2422_v17 }
  0x18   :  { %2211 = vmatprep.subr.bf16.mxu1 %v2424_v18 }
  0x1a   :  { %293 = vmatpush1.bf16.msra.mxu0 %v2425_v20 }
  0x1b   :  { %2212 = vmatpush3.bf16.msra.mxu1 %v2424_v18  ;;  %294 = vmatprep.subr.bf16.mxu0 %v2426_v21 }
  0x1c   :  { %2213 = vmatprep.subr.bf16.mxu1 %v2428_v22 }
  0x1e   :  { %295 = vmatpush1.bf16.msra.mxu0 %v2429_v23 }
  0x1f   :  { %2214 = vmatpush3.bf16.msra.mxu1 %v2428_v22  ;;  %296 = vmatprep.subr.bf16.mxu0 %v2430_v24 }
  0x20   :  { %2215 = vmatprep.subr.bf16.mxu1 %v2432_v25 }
  0x22   :  { %297 = vmatpush1.bf16.msra.mxu0 %v2433_v26 }
  0x23   :  { %2216 = vmatpush3.bf16.msra.mxu1 %v2432_v25  ;;  %2233 = vmatprep.subr.bf16.mxu0 %v3725_v31 }
  0x24   :  { %722 = vmatprep.subr.bf16.mxu1 %v2832_v27 }
  0x25   :  { %315 = vmatmul.mubr.bf16.vlgmr.msra.gmra.mrb[0].mxu0 %v2434_v19 }
  0x26   :  { %2218 = vmatmul.mubr.bf16.vlgmr.msra.gmra.mrb[0].mxu1 %v2435_v28  ;;  %2234 = vmatpush3.bf16.msra.mxu0 %v2845_v30 }
  0x27   :  { %723 = vmatpush1.bf16.msra.mxu1 %v2840_v29  ;;  %324 = vmatprep.mubr.bf16.mxu0 %v3723_v3 }
  0x28   :  { %724 = vmatprep.subr.bf16.mxu1 %v2852_v32  ;;  %2221 = vmatprep.mubr.bf16.mxu1 %v2443_v33 }
  0x29   :  { %2235 = vmatprep.subr.bf16.mxu0 %v3725_v31 }
  0x2a   :  { %2236 = vmatpush3.bf16.msra.mxu0 %v2867_v35 }
  0x2b   :  { %725 = vmatpush1.bf16.msra.mxu1 %v2860_v34  ;;  %2237 = vmatprep.subr.bf16.mxu0 %v3725_v31 }
  0x2c   :  { %726 = vmatprep.subr.bf16.mxu1 %v2874_v36 }
  0x2d   :  { %325 = vmatmul.mubr.bf16.gmra.mrb[4].mxu0 %v2435_v28 }
  0x2e   :  { %2222 = vmatmul.mubr.bf16.gmra.mrb[4].mxu1 %v2444_v37  ;;  %334 = vmatprep.mubr.bf16.mxu0 %v3723_v3 }
  0x2f   :  { %727 = vmatpush1.bf16.msra.mxu1 %v2883_v38  ;;  %2225 = vmatprep.mubr.bf16.mxu1 %v2896_v40 }
  0x30   :  { %728 = vmatprep.subr.bf16.mxu1 %v2890_v39  ;;  %2238 = vmatpush3.bf16.msra.mxu0 %v2902_v41 }
  0x31   :  { %2239 = vmatprep.subr.bf16.mxu0 %v3725_v31 }
  0x32   :  { %17 = vsyncpa [#allocation6], 0  ;;  %v2946_v49 = vld [vmem:[%s3717_s4 + $0x60] ss:$12 sps:$4 sm:$0xff]   ;;  %856 = vperm.xlu0 %2400, %v853_v48   ;;  %vm852_vm1 = vcmp.gt.s32.totalorder %v2926_v45, 0  ;;  %v2958_v51 = vld [vmem:[%s3713_s0 + $0x30] sm:$0xff]   ;;  %v91_v14 = vlaneseq }
  0x33   :  { %729 = vmatpush1.bf16.msra.mxu1 %v2908_v42  ;;  %v2953_v50 = vld [vmem:[%s3717_s4 + $0x7c] ss:$12 sps:$4 sm:$0xff]   ;;  %v854_v53 = vsel %vm852_vm1, 1, %v3723_v3  ;;  %v2972_v54 = vld [vmem:[%s3717_s4 + $0x78] ss:$12 sps:$4 sm:$0xff]   ;;  %vm1161_vm2 = vcmp.gt.s32.totalorder %v2921_v44, 2 }
  0x34   :  { %730 = vmatprep.subr.bf16.mxu1 %v2916_v43  ;;  %2240 = vmatpush3.bf16.msra.mxu0 %v2932_v46  ;;  %v2965_v52 = vld [vmem:[%s3717_s4 + $0x68] ss:$12 sps:$4 sm:$0xff]   ;;  %v2462_v56 = vld [vmem:[%s3713_s0 + $0x38] sm:$0xff]   ;;  %v1163_v57 = vsel %vm1161_vm2, 1, %v3723_v3  ;;  %vm1316_vm3 = vcmp.gt.s32.totalorder %v2921_v44, 3  ;;  %vm1471_vm4 = vcmp.gt.s32.totalorder %v2921_v44, 4 }
  0x35   :  { %335 = vmatmul.mubr.bf16.gmra.mrb[8].mxu0 %v2443_v33  ;;  %v2981_v55 = vld [vmem:[%s3717_s4 + $0x94] ss:$12 sps:$4 sm:$0xff]   ;;  %2241 = vmatprep.subr.bf16.mxu0 %v3725_v31  ;;  %v2993_v58 = vld [vmem:[%s3717_s4 + $0x90] ss:$12 sps:$4 sm:$0xff]   ;;  %v3001_v59 = vld [vmem:[%s3717_s4 + $0xac] ss:$12 sps:$4 sm:$0xff]  }
  0x36   :  { %2226 = vmatmul.mubr.bf16.gmra.mrb[8].mxu1 %v2938_v47  ;;  %344 = vmatprep.mubr.bf16.mxu0 %v3723_v3  ;;  %v3006_v60 = vld [vmem:[%s3717_s4 + $0x80] ss:$12 sps:$4 sm:$0xff]   ;;  %v1318_v61 = vsel %vm1316_vm3, 1, %v3723_v3  ;;  %v3013_v62 = vld [vmem:[%s3717_s4 + $0xa8] ss:$12 sps:$4 sm:$0xff]   ;;  %v1473_v0 = vsel %vm1471_vm4, 1, %v3723_v3 }
  0x37   :  { %731 = vmatpush1.bf16.msra.mxu1 %v2946_v49  ;;  %2229 = vmatprep.mubr.bf16.mxu1 %v2958_v51  ;;  %v3023_v63 = vld [vmem:[%s3717_s4 + $0x98] ss:$12 sps:$4 sm:$0xff]   ;;  %vm1626_vm5 = vcmp.gt.s32.totalorder %v2921_v44, 5  ;;  %v3034_v1 = vld [vmem:[%s3717_s4 + $0xb0] ss:$12 sps:$4 sm:$0xff]   ;;  %v2693_v2 = vmov 0.0|0.0  }
  0x38   :  { %732 = vmatprep.subr.bf16.mxu1 %v2953_v50  ;;  %859 = vperm.xlu0 %2400, %v854_v53   ;;  %v1628_v4 = vsel %vm1626_vm5, 1, %v3723_v3  ;;  %vm1781_vm6 = vcmp.gt.s32.totalorder %v2921_v44, 6  ;;  %vm1936_vm7 = vcmp.gt.s32.totalorder %v2921_v44, 7  ;;  %vm2694_vm8 = vmmov 0   ;;  %v89_v19 = vld [vmem:[%s3716_s3] sm:$0x7] }
  0x39   :  { %2242 = vmatpush3.bf16.msra.mxu0 %v2965_v52  ;;  %v1783_v5 = vsel %vm1781_vm6, 1, %v3723_v3  ;;  %v1938_v6 = vsel %vm1936_vm7, 1, %v3723_v3  ;;  %vm1006_vm9 = vcmp.gt.s32.totalorder %v2921_v44, 1  ;;  %vm1007_vm10 = vcmp.gt.s32.totalorder %v2926_v45, 1  ;;  %s2695_s3 = smov [#allocation5]  }
  0x3a   :  { %2243 = vmatprep.subr.bf16.mxu0 %v3725_v31  ;;  %v1008_v7 = vsel %vm1006_vm9, 1, %v3723_v3  ;;  %v1009_v8 = vsel %vm1007_vm10, 1, %v3723_v3  ;;  %vm1162_vm11 = vcmp.gt.s32.totalorder %v2926_v45, 2  ;;  %vm1317_vm12 = vcmp.gt.s32.totalorder %v2926_v45, 3  ;;  %s2001_s13 = sshll.u32 %s2695_s3, 4  ;;  %s2002_s13 = int_to_ptr.vmem [resolvable:$true] %s2001_s13 }
  0x3b   :  { %733 = vmatpush1.bf16.msra.mxu1 %v2972_v54  ;;  %1011 = vperm.xlu1 %2401, %v1008_v7   ;;  %v1164_v9 = vsel %vm1162_vm11, 1, %v3723_v3  ;;  %v1319_v10 = vsel %vm1317_vm12, 1, %v3723_v3  ;;  %vm1472_vm13 = vcmp.gt.s32.totalorder %v2926_v45, 4  ;;  %vm1627_vm14 = vcmp.gt.s32.totalorder %v2926_v45, 5  ;;  %p2672_p1 = scmp.lt.s32.totalorder %s2002_s13, %s2002_s13 }
  0x3c   :  { %734 = vmatprep.subr.bf16.mxu1 %v2981_v55  ;;  %1166 = vperm.xlu0 %2400, %v1163_v57   ;;  %v1474_v11 = vsel %vm1472_vm13, 1, %v3723_v3  ;;  %v1629_v12 = vsel %vm1627_vm14, 1, %v3723_v3  ;;  %vm1782_vm15 = vcmp.gt.s32.totalorder %v2926_v45, 6  ;;  %vm1937_vm0 = vcmp.gt.s32.totalorder %v2926_v45, 7 }
  0x3d   :  { %345 = vmatmul.mubr.bf16.gmra.mrb[12].mxu0 %v2444_v37  ;;  %v1784_v13 = vsel %vm1782_vm15, 1, %v3723_v3  ;;  %v1939_v15 = vsel %vm1937_vm0, 1, %v3723_v3  ;;  %v92_v16 = vshrl.u32 %v91_v14, 7 }
  0x3e   :  { %2230 = vmatmul.mubr.bf16.gmra.mrb[12].mxu1 %v2462_v56  ;;  %354 = vmatprep.mubr.bf16.mxu0 %v3723_v3 }
  0x3f   :  { %735 = vmatpush1.bf16.msra.mxu1 %v2993_v58  ;;  %754 = vmatprep.mubr.bf16.mxu1 %v3723_v3  ;;  %v101_v17 = vsub.s32 2, %v92_v16  ;;  %v93_v18 = vsub.s32 0, %v92_v16  ;;  %v97_v20 = vsub.s32 1, %v92_v16 }
  0x40   :  { %736 = vmatprep.subr.bf16.mxu1 %v3001_v59  ;;  %2244 = vmatpush3.bf16.msra.mxu0 %v3006_v60 }
  0x41   :  { %1321 = vperm.xlu0 %2400, %v1318_v61   ;;  %2245 = vmatprep.subr.bf16.mxu0 %v3725_v31  ;;  %v3106_v21 = vrot.slane %v89_v19, %v101_v17  ;;  %v3108_v22 = vrot.slane %v89_v19, %v93_v18  ;;  %v3110_v24 = vrot.slane %v89_v19, %v97_v20 }
  0x42   :  { %1014 = vperm.xlu1 %2401, %v1009_v8  }
  0x43   :  { %737 = vmatpush1.bf16.msra.mxu1 %v3013_v62 }
  0x44   :  { %876 = vmatprep.subr.bf16.mxu1 %v2832_v27  ;;  %2246 = vmatpush3.bf16.msra.mxu0 %v3023_v63 }
  0x45   :  { %1476 = vperm.xlu0 %2400, %v1473_v0   ;;  %355 = vmatmul.mubr.bf16.gmra.mrb[16].mxu0 %v2896_v40 }
  0x46   :  { %755 = vmatmul.mubr.bf16.vlgmr.msra.gmra.mrb[16].mxu1 %v2693_v2  ;;  %364 = vmatprep.mubr.bf16.mxu0 %v3723_v3 }
  0x47   :  { %2247 = vmatprep.subr.bf16.mxu0 %v3725_v31  ;;  %877 = vmatpush1.bf16.msra.mxu1 %v2840_v29 }
  0x48   :  { %908 = vmatprep.mubr.bf16.mxu1 %v3723_v3  ;;  %2248 = vmatpush3.bf16.msra.mxu0 %v3034_v1 }
  0x49   :  { %1631 = vperm.xlu0 %2400, %v1628_v4   ;;  %2253 = vmatprep.subr.bf16.mxu0 %v3725_v31 }
  0x4a   :  { %878 = vmatprep.subr.bf16.mxu1 %v2852_v32  ;;  %1169 = vperm.xlu1 %2401, %v1164_v9  }
  0x4b   :  { %879 = vmatpush1.bf16.msra.mxu1 %v2860_v34 }
  0x4c   :  { %880 = vmatprep.subr.bf16.mxu1 %v2874_v36 }
  0x4d   :  { %1786 = vperm.xlu0 %2400, %v1783_v5   ;;  %365 = vmatmul.mubr.bf16.gmra.mrb[20].mxu0 %v2938_v47 }
  0x4e   :  { %374 = vmatprep.mubr.bf16.mxu0 %v3723_v3  ;;  %1324 = vperm.xlu1 %2401, %v1319_v10  }
  0x4f   :  { %881 = vmatpush1.bf16.msra.mxu1 %v2883_v38 }
  0x50   :  { %882 = vmatprep.subr.bf16.mxu1 %v2890_v39 }
  0x51   :  { %1941 = vperm.xlu0 %2400, %v1938_v6  }
  0x52   :  { %1479 = vperm.xlu1 %2401, %v1474_v11  }
  0x53   :  { %883 = vmatpush1.bf16.msra.mxu1 %v2908_v42 }
  0x54   :  { %884 = vmatprep.subr.bf16.mxu1 %v2916_v43 }
  0x55   :  { %375 = vmatmul.mubr.bf16.gmra.mrb[24].mxu0 %v2958_v51 }
  0x56   :  { %384 = vmatprep.mubr.bf16.mxu0 %v3723_v3  ;;  %1634 = vperm.xlu1 %2401, %v1629_v12  }
  0x57   :  { %885 = vmatpush1.bf16.msra.mxu1 %v2946_v49 }
  0x58   :  { %886 = vmatprep.subr.bf16.mxu1 %v2953_v50 }
  0x5a   :  { %1789 = vperm.xlu1 %2401, %v1784_v13  }
  0x5b   :  { %887 = vmatpush1.bf16.msra.mxu1 %v2972_v54 }
  0x5c   :  { %888 = vmatprep.subr.bf16.mxu1 %v2981_v55 }
  0x5d   :  { %385 = vmatmul.mubr.bf16.gmra.mrb[28].mxu0 %v2462_v56 }
  0x5e   :  { %2249 = vmatprep.mubr.msk.bf16.mxu0 %vm2694_vm8, %v3725_v31  ;;  %1944 = vperm.xlu1 %2401, %v1939_v15  }
  0x5f   :  { %889 = vmatpush1.bf16.msra.mxu1 %v2993_v58 }
  0x60   :  { %890 = vmatprep.subr.bf16.mxu1 %v3001_v59 }
  0x63   :  { %891 = vmatpush1.bf16.msra.mxu1 %v3013_v62 }
  0x64   :  { %1031 = vmatprep.subr.bf16.mxu1 %v2832_v27 }
  0x65   :  { %2250 = vmatmul.mubr.bf16.vlgmr.msra.gmra.mrb[32].mxu0 %v2693_v2 }
  0x66   :  { %2254 = vmatpush3.bf16.msra.mxu0 %v2845_v30  ;;  %2269 = vmatprep.mubr.msk.bf16.mxu0 %vm2694_vm8, %v3725_v31 }
  0x67   :  { %2255 = vmatprep.subr.bf16.mxu0 %v3725_v31 }
  0x6a   :  { %2256 = vmatpush3.bf16.msra.mxu0 %v2867_v35 }
  0x6b   :  { %2257 = vmatprep.subr.bf16.mxu0 %v3725_v31 }
  0x6e   :  { %2258 = vmatpush3.bf16.msra.mxu0 %v2902_v41 }
  0x6f   :  { %2259 = vmatprep.subr.bf16.mxu0 %v3725_v31 }
  0x72   :  { %2260 = vmatpush3.bf16.msra.mxu0 %v2932_v46 }
  0x73   :  { %2261 = vmatprep.subr.bf16.mxu0 %v3725_v31 }
  0x76   :  { %2262 = vmatpush3.bf16.msra.mxu0 %v2965_v52 }
  0x77   :  { %2263 = vmatprep.subr.bf16.mxu0 %v3725_v31 }
  0x7a   :  { %2264 = vmatpush3.bf16.msra.mxu0 %v3006_v60 }
  0x7b   :  { %2265 = vmatprep.subr.bf16.mxu0 %v3725_v31 }
  0x7e   :  { %2266 = vmatpush3.bf16.msra.mxu0 %v3023_v63 }
  0x7f   :  { %2267 = vmatprep.subr.bf16.mxu0 %v3725_v31 }
  0x82   :  { %2268 = vmatpush3.bf16.msra.mxu0 %v3034_v1 }
  0x83   :  { %2273 = vmatprep.subr.bf16.mxu0 %v3725_v31 }
  0xb1   :  { %v3221_v31 = vpop.permute.xlu0 %856 }
  0xb2   :  { %vm861_vm1 = vcmp.eq.s32.totalorder %v3221_v31, 1 }
  0xf8   :  { %v316_v23 = vpop.f32.mrb[0].mxu0 }
  0xf9   :  { %v2219_v25 = vpop.f32.mrb[0].mxu1  ;;  %v318_v26 = vpop.f32.mrb[1].mxu0  ;;  %v317_v45 = vadd.f32 %v316_v23, %v3108_v22 }
  0xfa   :  { %v438_v28 = vadd.f32 %v2219_v25, %v3106_v21  ;;  %v429_v33 = vpop.f32.mrb[1].mxu1  ;;  %v320_v37 = vpop.f32.mrb[2].mxu0  ;;  %v319_v56 = vadd.f32 %v318_v26, %v3110_v24 }
  0xfb   :  { %v430_v40 = vadd.f32 %v429_v33, %v3106_v21  ;;  %v2220_v44 = vpop.f32.mrb[2].mxu1  ;;  %v321_v47 = vadd.f32 %v320_v37, %v3108_v22  ;;  %v322_v48 = vpop.f32.mrb[3].mxu0 }
  0xfc   :  { %v441_v51 = vadd.f32 %v2220_v44, %v3106_v21  ;;  %v432_v53 = vpop.f32.mrb[3].mxu1  ;;  %v323_v57 = vadd.f32 %v322_v48, %v3110_v24 }
  0xfd   :  { %v433_v61 = vadd.f32 %v432_v53, %v3106_v21  ;;  %v3120_v0 = vpack.c.bf16 %v321_v47, %v317_v45 }
  0xfe   :  { %v3122_v2 = vpack.c.bf16 %v441_v51, %v438_v28  ;;  %v3124_v4 = vpack.c.bf16 %v323_v57, %v319_v56 }
  0xff   :  { %v3126_v5 = vpack.c.bf16 %v433_v61, %v430_v40 }
 0x100   :  { %v326_v6 = vpop.f32.mrb[4].mxu0 }
 0x101   :  { %v2223_v7 = vpop.f32.mrb[4].mxu1  ;;  %v327_v8 = vadd.f32 %v326_v6, %v3108_v22  ;;  %v328_v9 = vpop.f32.mrb[5].mxu0 }
 0x102   :  { %v454_v10 = vadd.f32 %v2223_v7, %v3106_v21  ;;  %v445_v11 = vpop.f32.mrb[5].mxu1  ;;  %v329_v12 = vadd.f32 %v328_v9, %v3110_v24  ;;  %v330_v13 = vpop.f32.mrb[6].mxu0 }
 0x103   :  { %v446_v14 = vadd.f32 %v445_v11, %v3106_v21  ;;  %v2224_v15 = vpop.f32.mrb[6].mxu1  ;;  %v331_v16 = vadd.f32 %v330_v13, %v3108_v22  ;;  %v332_v17 = vpop.f32.mrb[7].mxu0 }
 0x104   :  { %v457_v18 = vadd.f32 %v2224_v15, %v3106_v21  ;;  %v448_v19 = vpop.f32.mrb[7].mxu1  ;;  %v333_v20 = vadd.f32 %v332_v17, %v3110_v24 }
 0x105   :  { %v449_v23 = vadd.f32 %v448_v19, %v3106_v21  ;;  %v3136_v25 = vpack.c.bf16 %v331_v16, %v327_v8 }
 0x106   :  { %v3138_v26 = vpack.c.bf16 %v457_v18, %v454_v10  ;;  %v3140_v28 = vpack.c.bf16 %v333_v20, %v329_v12 }
 0x107   :  { %v3142_v33 = vpack.c.bf16 %v449_v23, %v446_v14 }
 0x108   :  { %v336_v37 = vpop.f32.mrb[8].mxu0 }
 0x109   :  { %v2227_v40 = vpop.f32.mrb[8].mxu1  ;;  %v337_v44 = vadd.f32 %v336_v37, %v3108_v22  ;;  %v338_v45 = vpop.f32.mrb[9].mxu0 }
 0x10a   :  { %v470_v47 = vadd.f32 %v2227_v40, %v3106_v21  ;;  %v461_v48 = vpop.f32.mrb[9].mxu1  ;;  %v339_v51 = vadd.f32 %v338_v45, %v3110_v24  ;;  %v340_v53 = vpop.f32.mrb[10].mxu0 }
 0x10b   :  { %v462_v56 = vadd.f32 %v461_v48, %v3106_v21  ;;  %v2228_v57 = vpop.f32.mrb[10].mxu1  ;;  %v341_v61 = vadd.f32 %v340_v53, %v3108_v22  ;;  %v342_v6 = vpop.f32.mrb[11].mxu0 }
 0x10c   :  { %v473_v7 = vadd.f32 %v2228_v57, %v3106_v21  ;;  %v464_v8 = vpop.f32.mrb[11].mxu1  ;;  %v343_v9 = vadd.f32 %v342_v6, %v3110_v24 }
 0x10d   :  { %v465_v10 = vadd.f32 %v464_v8, %v3106_v21  ;;  %v3152_v11 = vpack.c.bf16 %v341_v61, %v337_v44  ;;  %v587_v8 = vunpack.c.l.bf16 %v3120_v0 }
 0x10e   :  { %v3154_v12 = vpack.c.bf16 %v473_v7, %v470_v47  ;;  %v3156_v13 = vpack.c.bf16 %v343_v9, %v339_v51 }
 0x10f   :  { %v3158_v14 = vpack.c.bf16 %v465_v10, %v462_v56 }
 0x110   :  { %3734 = vst [vmem:[#allocation8_spill] sm:$0xff] %v3154_v12  ;;  %v346_v15 = vpop.f32.mrb[12].mxu0 }
 0x111   :  { %v2231_v16 = vpop.f32.mrb[12].mxu1  ;;  %v347_v17 = vadd.f32 %v346_v15, %v3108_v22  ;;  %v348_v18 = vpop.f32.mrb[13].mxu0  ;;  %v588_v15 = vunpack.c.l.bf16 %v3124_v4 }
 0x112   :  { %v486_v19 = vadd.f32 %v2231_v16, %v3106_v21  ;;  %v477_v20 = vpop.f32.mrb[13].mxu1  ;;  %v349_v23 = vadd.f32 %v348_v18, %v3110_v24  ;;  %v350_v37 = vpop.f32.mrb[14].mxu0 }
 0x113   :  { %v478_v40 = vadd.f32 %v477_v20, %v3106_v21  ;;  %v2232_v44 = vpop.f32.mrb[14].mxu1  ;;  %v351_v45 = vadd.f32 %v350_v37, %v3108_v22  ;;  %v352_v47 = vpop.f32.mrb[15].mxu0 }
 0x114   :  { %v489_v48 = vadd.f32 %v2232_v44, %v3106_v21  ;;  %v480_v51 = vpop.f32.mrb[15].mxu1  ;;  %v353_v53 = vadd.f32 %v352_v47, %v3110_v24 }
 0x115   :  { %v481_v56 = vadd.f32 %v480_v51, %v3106_v21  ;;  %v3168_v57 = vpack.c.bf16 %v351_v45, %v347_v17  ;;  %v590_v21 = vunpack.c.h.bf16 %v3120_v0 }
 0x116   :  { %v3170_v61 = vpack.c.bf16 %v489_v48, %v486_v19  ;;  %v3172_v6 = vpack.c.bf16 %v353_v53, %v349_v23 }
 0x117   :  { %v3174_v7 = vpack.c.bf16 %v481_v56, %v478_v40  ;;  %v591_v40 = vunpack.c.h.bf16 %v3124_v4 }
 0x118   :  { %3735 = vst [vmem:[#allocation9_spill] sm:$0xff] %v3170_v61  ;;  %v356_v9 = vpop.f32.mrb[16].mxu0 }
 0x119   :  { %3736 = vst [vmem:[#allocation10_spill] sm:$0xff] %v3174_v7  ;;  %v756_v10 = vpop.f32.mrb[16].mxu1  ;;  %v357_v16 = vadd.f32 %v356_v9, %v3108_v22  ;;  %v358_v20 = vpop.f32.mrb[17].mxu0 }
 0x11a   :  { %v806_v18 = vadd.f32 %v756_v10, %v587_v8  ;;  %v758_v37 = vpop.f32.mrb[17].mxu1  ;;  %v359_v17 = vadd.f32 %v358_v20, %v3110_v24  ;;  %v360_v23 = vpop.f32.mrb[18].mxu0 }
 0x11b   :  { %v807_v19 = vadd.f32 %v758_v37, %v588_v15  ;;  %v760_v44 = vpop.f32.mrb[18].mxu1  ;;  %v361_v47 = vadd.f32 %v360_v23, %v3108_v22  ;;  %v362_v51 = vpop.f32.mrb[19].mxu0 }
 0x11c   :  { %v2071_v45 = vmul.f32 -1.442695, %v806_v18  ;;  %v808_v48 = vadd.f32 %v760_v44, %v590_v21  ;;  %v762_v53 = vpop.f32.mrb[19].mxu1  ;;  %v363_v56 = vadd.f32 %v362_v51, %v3110_v24 }
 0x11d   :  { %v809_v8 = vadd.f32 %v762_v53, %v591_v40  ;;  %v3184_v9 = vpack.c.bf16 %v361_v47, %v357_v16  ;;  %v2072_v16 = vmul.f32 -1.442695, %v807_v19 }
 0x11e   :  { %v2073_v10 = vmul.f32 -1.442695, %v808_v48  ;;  %v3186_v0 = vpack.c.bf16 %v363_v56, %v359_v17  ;;  %2474 = vpow2.f32 %v2071_v45 }
 0x11f   :  { %v2074_v17 = vmul.f32 -1.442695, %v809_v8 }
 0x120   :  { %v366_v15 = vpop.f32.mrb[20].mxu0  ;;  %2476 = vpow2.f32 %v2073_v10 }
 0x121   :  { %v367_v20 = vadd.f32 %v366_v15, %v3108_v22  ;;  %v368_v4 = vpop.f32.mrb[21].mxu0  ;;  %2478 = vpow2.f32 %v2072_v16 }
 0x122   :  { %v369_v18 = vadd.f32 %v368_v4, %v3110_v24  ;;  %v370_v37 = vpop.f32.mrb[22].mxu0  ;;  %2480 = vpow2.f32 %v2074_v17 }
 0x123   :  { %v371_v21 = vadd.f32 %v370_v37, %v3108_v22  ;;  %v372_v23 = vpop.f32.mrb[23].mxu0 }
 0x124   :  { %v373_v44 = vadd.f32 %v372_v23, %v3110_v24 }
 0x125   :  { %v3192_v40 = vpack.c.bf16 %v371_v21, %v367_v20 }
 0x126   :  { %v3194_v47 = vpack.c.bf16 %v373_v44, %v369_v18 }
 0x128   :  { %v376_v45 = vpop.f32.mrb[24].mxu0  ;;  %v2475_v48 = vpop.eup %2474 }
 0x129   :  { %v377_v51 = vadd.f32 %v376_v45, %v3108_v22  ;;  %v378_v53 = vpop.f32.mrb[25].mxu0  ;;  %v822_v23 = vadd.f32 1.0, %v2475_v48 }
 0x12a   :  { %v379_v56 = vadd.f32 %v378_v53, %v3110_v24  ;;  %v380_v10 = vpop.f32.mrb[26].mxu0  ;;  %v2477_v15 = vpop.eup %2476 }
 0x12b   :  { %v381_v4 = vadd.f32 %v380_v10, %v3108_v22  ;;  %v382_v37 = vpop.f32.mrb[27].mxu0  ;;  %v824_v8 = vadd.f32 1.0, %v2477_v15  ;;  %2482 = vrcp.f32 %v822_v23  ;;  %v2479_v17 = vpop.eup %2478 }
 0x12c   :  { %v383_v19 = vadd.f32 %v382_v37, %v3110_v24  ;;  %v2481_v15 = vpop.eup %2480  ;;  %v823_v23 = vadd.f32 1.0, %v2479_v17 }
 0x12d   :  { %v3200_v20 = vpack.c.bf16 %v381_v4, %v377_v51  ;;  %2484 = vrcp.f32 %v824_v8  ;;  %v3215_v4 = vld [vmem:[%s3718_s5] ss:$0 sm:$0xff]  ;;  %v825_v8 = vadd.f32 1.0, %v2481_v15 }
 0x12e   :  { %v3202_v18 = vpack.c.bf16 %v383_v19, %v379_v56  ;;  %2486 = vrcp.f32 %v823_v23 }
 0x12f   :  { %3737 = vst [vmem:[#allocation11_spill] sm:$0xff] %v3200_v20  ;;  %2488 = vrcp.f32 %v825_v8 }
 0x130   :  { %3738 = vst [vmem:[#allocation12_spill] sm:$0xff] %v3202_v18  ;;  %v386_v21 = vpop.f32.mrb[28].mxu0 }
 0x131   :  { %v387_v44 = vadd.f32 %v386_v21, %v3108_v22  ;;  %v388_v16 = vpop.f32.mrb[29].mxu0 }
 0x132   :  { %v389_v45 = vadd.f32 %v388_v16, %v3110_v24  ;;  %v390_v53 = vpop.f32.mrb[30].mxu0 }
 0x133   :  { %v391_v10 = vadd.f32 %v390_v53, %v3108_v22  ;;  %v392_v48 = vpop.f32.mrb[31].mxu0 }
 0x134   :  { %v393_v37 = vadd.f32 %v392_v48, %v3110_v24  ;;  %v589_v24 = vunpack.c.l.bf16 %v3126_v5 }
 0x135   :  { %v3208_v51 = vpack.c.bf16 %v391_v10, %v387_v44  ;;  %v2483_v16 = vpop.eup %2482 }
 0x136   :  { %v3210_v56 = vpack.c.bf16 %v393_v37, %v389_v45  ;;  %v592_v37 = vunpack.c.h.bf16 %v3126_v5  ;;  %v3225_v5 = vpop.permute.xlu0 %859 }
 0x137   :  { %3739 = vst [vmem:[#allocation13_spill] sm:$0xff] %v3208_v51  ;;  %v2485_v48 = vpop.eup %2484  ;;  %vm862_vm2 = vcmp.eq.s32.totalorder %v3225_v5, 1 }
 0x138   :  { %3740 = vst [vmem:[#allocation14_spill] sm:$0xff] %v3210_v56  ;;  %v799_v19 = vpop.f32.mrb[32].mxu0  ;;  %vm2107_vm3 = vmpackc.low %vm862_vm2, %vm861_vm1 }
 0x139   :  { %v834_v21 = vadd.f32 %v3215_v4, %v799_v19  ;;  %v2251_v22 = vpop.f32.mrb[33].mxu0  ;;  %v2487_v19 = vpop.eup %2486 }
 0x13a   :  { %v802_v53 = vpop.f32.mrb[34].mxu0  ;;  %v2489_v22 = vpop.eup %2488  ;;  %v842_v61 = vsub.f32 1.0, %v2487_v19  ;;  %v846_v23 = vmul.f32 0.0, %v2487_v19 }
 0x13b   :  { %v836_v44 = vmul.f32 %v2483_v16, %v834_v21  ;;  %v835_v45 = vadd.f32 %v3215_v4, %v802_v53  ;;  %v2252_v10 = vpop.f32.mrb[35].mxu0  ;;  %v843_v21 = vsub.f32 1.0, %v2489_v22 }
 0x13c   :  { %v847_v10 = vmul.f32 0.0, %v2489_v22 }
 0x13d   :  { %v838_v3 = vadd.f32 %v836_v44, %v589_v24  ;;  %v837_v17 = vmul.f32 %v2485_v48, %v835_v45  ;;  %v870_v45 = vunpack.c.l.bf16 %v3140_v28 }
 0x13f   :  { %2490 = vtanh.f32 %v838_v3  ;;  %v839_v15 = vadd.f32 %v837_v17, %v592_v37 }
 0x141   :  { %2492 = vtanh.f32 %v839_v15  ;;  %v872_v15 = vunpack.c.h.bf16 %v3136_v25 }
 0x149   :  { %v2491_v56 = vpop.eup %2490 }
 0x14a   :  { %v844_v16 = vmul.f32 %v2491_v56, %v842_v61  ;;  %v3741_v61 = vmov 0.0   ;;  %v869_v56 = vunpack.c.l.bf16 %v3136_v25 }
 0x14b   :  { %v2493_v53 = vpop.eup %2492 }
 0x14c   :  { %v845_v51 = vmul.f32 %v2493_v53, %v843_v21  ;;  %v3223_v7 = vadd.f32 %v846_v23, %v844_v16  ;;  %v873_v21 = vunpack.c.h.bf16 %v3140_v28 }
 0x14e   :  { %v3229_v3 = vadd.f32 %v847_v10, %v845_v51  ;;  %v3742_v51 = vmov 0  }
 0x150   :  { %v2108_v8 = vpack.c.bf16 %v3229_v3, %v3223_v7 }
 0x152   :  { %2109 = vmatmul.mubr.msk.bf16.vlgmr.msra.gmra.mrb[20].mxu1 %vm2107_vm3, %v2108_v8  ;;  %2270 = vmatmul.mubr.msk.bf16.vlgmr.msra.gmra.mrb[36].mxu0 %vm2107_vm3, %v2108_v8 }
 0x153   :  { %1032 = vmatpush1.bf16.msra.mxu1 %v2840_v29  ;;  %2274 = vmatpush3.bf16.msra.mxu0 %v2845_v30 }
 0x154   :  { %1033 = vmatprep.subr.bf16.mxu1 %v2852_v32  ;;  %2275 = vmatprep.subr.bf16.mxu0 %v3741_v61 }
 0x155   :  { %1063 = vmatprep.mubr.bf16.mxu1 %v3742_v51  ;;  %2289 = vmatprep.mubr.msk.bf16.mxu0 %vm2694_vm8, %v3741_v61 }
 0x157   :  { %1034 = vmatpush1.bf16.msra.mxu1 %v2860_v34  ;;  %2276 = vmatpush3.bf16.msra.mxu0 %v2867_v35 }
 0x158   :  { %1035 = vmatprep.subr.bf16.mxu1 %v2874_v36  ;;  %2277 = vmatprep.subr.bf16.mxu0 %v3741_v61 }
 0x15b   :  { %1036 = vmatpush1.bf16.msra.mxu1 %v2883_v38  ;;  %2278 = vmatpush3.bf16.msra.mxu0 %v2902_v41 }
 0x15c   :  { %1037 = vmatprep.subr.bf16.mxu1 %v2890_v39  ;;  %2279 = vmatprep.subr.bf16.mxu0 %v3741_v61 }
 0x15f   :  { %1038 = vmatpush1.bf16.msra.mxu1 %v2908_v42  ;;  %2280 = vmatpush3.bf16.msra.mxu0 %v2932_v46 }
 0x160   :  { %1039 = vmatprep.subr.bf16.mxu1 %v2916_v43  ;;  %2281 = vmatprep.subr.bf16.mxu0 %v3741_v61 }
 0x163   :  { %1040 = vmatpush1.bf16.msra.mxu1 %v2946_v49  ;;  %2282 = vmatpush3.bf16.msra.mxu0 %v2965_v52 }
 0x164   :  { %1041 = vmatprep.subr.bf16.mxu1 %v2953_v50  ;;  %2283 = vmatprep.subr.bf16.mxu0 %v3741_v61 }
 0x167   :  { %1042 = vmatpush1.bf16.msra.mxu1 %v2972_v54  ;;  %2284 = vmatpush3.bf16.msra.mxu0 %v3006_v60 }
 0x168   :  { %1043 = vmatprep.subr.bf16.mxu1 %v2981_v55  ;;  %2285 = vmatprep.subr.bf16.mxu0 %v3741_v61 }
 0x16b   :  { %1044 = vmatpush1.bf16.msra.mxu1 %v2993_v58  ;;  %2286 = vmatpush3.bf16.msra.mxu0 %v3023_v63 }
 0x16c   :  { %1045 = vmatprep.subr.bf16.mxu1 %v3001_v59  ;;  %2287 = vmatprep.subr.bf16.mxu0 %v3741_v61 }
 0x16f   :  { %1046 = vmatpush1.bf16.msra.mxu1 %v3013_v62  ;;  %2288 = vmatpush3.bf16.msra.mxu0 %v3034_v1 }
 0x170   :  { %1186 = vmatprep.subr.bf16.mxu1 %v2832_v27  ;;  %2293 = vmatprep.subr.bf16.mxu0 %v3741_v61 }
 0x225   :  { %v910_v24 = vpop.f32.mrb[20].mxu1  ;;  %v953_v44 = vpop.f32.mrb[36].mxu0 }
 0x226   :  { %v960_v48 = vadd.f32 %v910_v24, %v869_v56  ;;  %v912_v37 = vpop.f32.mrb[21].mxu1  ;;  %v2271_v17 = vpop.f32.mrb[37].mxu0 }
 0x227   :  { %v961_v19 = vadd.f32 %v912_v37, %v870_v45  ;;  %v914_v22 = vpop.f32.mrb[22].mxu1  ;;  %v956_v23 = vpop.f32.mrb[38].mxu0 }
 0x228   :  { %v2075_v16 = vmul.f32 -1.442695, %v960_v48  ;;  %v962_v27 = vadd.f32 %v914_v22, %v872_v15  ;;  %v916_v53 = vpop.f32.mrb[23].mxu1  ;;  %v2272_v10 = vpop.f32.mrb[39].mxu0  ;;  %v988_v15 = vadd.f32 %v3215_v4, %v953_v44  ;;  %v864_v44 = vsel %vm862_vm2, %v3229_v3, 0.0 }
 0x229   :  { %v2076_v8 = vmul.f32 -1.442695, %v961_v19  ;;  %v963_v18 = vadd.f32 %v916_v53, %v873_v21  ;;  %v863_v21 = vsel %vm861_vm1, %v3223_v7, 0.0  ;;  %v874_v10 = vunpack.c.h.bf16 %v3122_v2 }
 0x22a   :  { %2494 = vpow2.f32 %v2075_v16  ;;  %v2077_v20 = vmul.f32 -1.442695, %v962_v27 }
 0x22b   :  { %2496 = vpow2.f32 %v2076_v8  ;;  %v2078_v12 = vmul.f32 -1.442695, %v963_v18  ;;  %v871_v18 = vunpack.c.l.bf16 %v3122_v2 }
 0x22c   :  { %2498 = vpow2.f32 %v2077_v20 }
 0x22d   :  { %2500 = vpow2.f32 %v2078_v12  ;;  %v989_v12 = vadd.f32 %v3215_v4, %v956_v23  ;;  %v1012_v23 = vpop.permute.xlu1 %1011 }
 0x22e   :  { %vm1016_vm4 = vcmp.eq.s32.totalorder %v1012_v23, 1 }
 0x234   :  { %v2495_v56 = vpop.eup %2494 }
 0x235   :  { %v2497_v24 = vpop.eup %2496  ;;  %v976_v25 = vadd.f32 1.0, %v2495_v56 }
 0x236   :  { %v2499_v45 = vpop.eup %2498  ;;  %v977_v37 = vadd.f32 1.0, %v2497_v24 }
 0x237   :  { %v2501_v17 = vpop.eup %2500  ;;  %2502 = vrcp.f32 %v976_v25  ;;  %v978_v28 = vadd.f32 1.0, %v2499_v45 }
 0x238   :  { %2504 = vrcp.f32 %v977_v37  ;;  %v979_v48 = vadd.f32 1.0, %v2501_v17 }
 0x239   :  { %2506 = vrcp.f32 %v978_v28 }
 0x23a   :  { %2508 = vrcp.f32 %v979_v48 }
 0x241   :  { %v2503_v19 = vpop.eup %2502 }
 0x242   :  { %v2505_v22 = vpop.eup %2504  ;;  %v990_v20 = vmul.f32 %v2503_v19, %v988_v15  ;;  %v1015_v15 = vpop.permute.xlu1 %1014 }
 0x243   :  { %v2507_v16 = vpop.eup %2506  ;;  %v1000_v27 = vmul.f32 %v2505_v22, %v863_v21  ;;  %v996_v45 = vsub.f32 1.0, %v2505_v22  ;;  %vm1017_vm5 = vcmp.eq.s32.totalorder %v1015_v15, 1 }
 0x244   :  { %v2509_v53 = vpop.eup %2508  ;;  %v992_v8 = vadd.f32 %v990_v20, %v871_v18  ;;  %v991_v56 = vmul.f32 %v2507_v16, %v989_v12 }
 0x245   :  { %v1001_v24 = vmul.f32 %v2509_v53, %v864_v44  ;;  %v997_v7 = vsub.f32 1.0, %v2509_v53 }
 0x246   :  { %2510 = vtanh.f32 %v992_v8  ;;  %v993_v25 = vadd.f32 %v991_v56, %v874_v10  ;;  %v1029_v56 = vunpack.c.h.bf16 %v3142_v33 }
 0x248   :  { %2512 = vtanh.f32 %v993_v25 }
 0x250   :  { %v2511_v37 = vpop.eup %2510 }
 0x251   :  { %v998_v31 = vmul.f32 %v2511_v37, %v996_v45 }
 0x252   :  { %v2513_v17 = vpop.eup %2512 }
 0x253   :  { %v1002_v28 = vadd.f32 %v1000_v27, %v998_v31  ;;  %v999_v48 = vmul.f32 %v2513_v17, %v997_v7  ;;  %v1026_v27 = vunpack.c.l.bf16 %v3142_v33  ;;  %v1167_v33 = vpop.permute.xlu0 %1166 }
 0x254   :  { %vm1171_vm6 = vcmp.eq.s32.totalorder %v1167_v33, 1 }
 0x255   :  { %v3286_v2 = vsel %vm1016_vm4, %v1002_v28, %v863_v21  ;;  %v1003_v19 = vadd.f32 %v1001_v24, %v999_v48 }
 0x257   :  { %v3288_v5 = vsel %vm1017_vm5, %v1003_v19, %v864_v44 }
 0x258   :  { %v1030_v3 = vpack.c.bf16 %v3288_v5, %v3286_v2 }
 0x25a   :  { %1064 = vmatmul.mubr.bf16.vlgmr.msra.gmra.mrb[24].mxu1 %v1030_v3  ;;  %2290 = vmatmul.mubr.bf16.vlgmr.msra.gmra.mrb[40].mxu0 %v1030_v3 }
 0x25b   :  { %1187 = vmatpush1.bf16.msra.mxu1 %v2840_v29  ;;  %2294 = vmatpush3.bf16.msra.mxu0 %v2845_v30  ;;  %v3328_v29 = vld [vmem:[%s3717_s4 + $0x4] ss:$12 sps:$4 sm:$0xff]   ;;  %v1024_v30 = vunpack.c.l.bf16 %v3152_v11 }
 0x25c   :  { %1188 = vmatprep.subr.bf16.mxu1 %v2852_v32  ;;  %2295 = vmatprep.subr.bf16.mxu0 %v3741_v61 }
 0x25d   :  { %1218 = vmatprep.mubr.bf16.mxu1 %v3742_v51  ;;  %2309 = vmatprep.mubr.msk.bf16.mxu0 %vm2694_vm8, %v3741_v61 }
 0x25f   :  { %1189 = vmatpush1.bf16.msra.mxu1 %v2860_v34  ;;  %2296 = vmatpush3.bf16.msra.mxu0 %v2867_v35  ;;  %v1025_v35 = vunpack.c.l.bf16 %v3156_v13 }
 0x260   :  { %1190 = vmatprep.subr.bf16.mxu1 %v2874_v36  ;;  %2297 = vmatprep.subr.bf16.mxu0 %v3741_v61 }
 0x263   :  { %1191 = vmatpush1.bf16.msra.mxu1 %v2883_v38  ;;  %2298 = vmatpush3.bf16.msra.mxu0 %v2902_v41  ;;  %v1027_v41 = vunpack.c.h.bf16 %v3152_v11 }
 0x264   :  { %1192 = vmatprep.subr.bf16.mxu1 %v2890_v39  ;;  %2299 = vmatprep.subr.bf16.mxu0 %v3741_v61 }
 0x267   :  { %1193 = vmatpush1.bf16.msra.mxu1 %v2908_v42  ;;  %2300 = vmatpush3.bf16.msra.mxu0 %v2932_v46 }
 0x268   :  { %1194 = vmatprep.subr.bf16.mxu1 %v2916_v43  ;;  %2301 = vmatprep.subr.bf16.mxu0 %v3741_v61 }
 0x26b   :  { %1195 = vmatpush1.bf16.msra.mxu1 %v2946_v49  ;;  %2302 = vmatpush3.bf16.msra.mxu0 %v2965_v52  ;;  %v1028_v49 = vunpack.c.h.bf16 %v3156_v13 }
 0x26c   :  { %1196 = vmatprep.subr.bf16.mxu1 %v2953_v50  ;;  %2303 = vmatprep.subr.bf16.mxu0 %v3741_v61 }
 0x26f   :  { %1197 = vmatpush1.bf16.msra.mxu1 %v2972_v54  ;;  %2304 = vmatpush3.bf16.msra.mxu0 %v3006_v60 }
 0x270   :  { %1198 = vmatprep.subr.bf16.mxu1 %v2981_v55  ;;  %2305 = vmatprep.subr.bf16.mxu0 %v3741_v61 }
 0x273   :  { %1199 = vmatpush1.bf16.msra.mxu1 %v2993_v58  ;;  %2306 = vmatpush3.bf16.msra.mxu0 %v3023_v63 }
 0x274   :  { %1200 = vmatprep.subr.bf16.mxu1 %v3001_v59  ;;  %2307 = vmatprep.subr.bf16.mxu0 %v3741_v61 }
 0x277   :  { %1201 = vmatpush1.bf16.msra.mxu1 %v3013_v62  ;;  %2308 = vmatpush3.bf16.msra.mxu0 %v3034_v1 }
 0x278   :  { %1341 = vmatprep.subr.bf16.mxu1 %v3328_v29  ;;  %2313 = vmatprep.subr.bf16.mxu0 %v3741_v61 }
 0x32d   :  { %v1065_v32 = vpop.f32.mrb[24].mxu1  ;;  %v1108_v34 = vpop.f32.mrb[40].mxu0 }
 0x32e   :  { %v1115_v36 = vadd.f32 %v1065_v32, %v1024_v30  ;;  %v1067_v38 = vpop.f32.mrb[25].mxu1  ;;  %v2291_v39 = vpop.f32.mrb[41].mxu0  ;;  %v1143_v12 = vadd.f32 %v3215_v4, %v1108_v34 }
 0x32f   :  { %v1116_v42 = vadd.f32 %v1067_v38, %v1025_v35  ;;  %v1069_v43 = vpop.f32.mrb[26].mxu1  ;;  %v1111_v46 = vpop.f32.mrb[42].mxu0  ;;  %v3353_v38 = vld [vmem:[%s3717_s4] ss:$12 sps:$4 sm:$0xff]   ;;  %v3375_v39 = vld [vmem:[%s3717_s4 + $0x18] ss:$12 sps:$4 sm:$0xff]  }
 0x330   :  { %v2079_v50 = vmul.f32 -1.442695, %v1115_v36  ;;  %v1117_v52 = vadd.f32 %v1069_v43, %v1027_v41  ;;  %v1071_v54 = vpop.f32.mrb[27].mxu1  ;;  %v2292_v55 = vpop.f32.mrb[43].mxu0  ;;  %v1144_v10 = vadd.f32 %v3215_v4, %v1111_v46  ;;  %v3381_v41 = vld [vmem:[%s3717_s4 + $0x20] ss:$12 sps:$4 sm:$0xff]  }
 0x331   :  { %v1118_v58 = vadd.f32 %v1071_v54, %v1028_v49  ;;  %v2080_v60 = vmul.f32 -1.442695, %v1116_v42  ;;  %v1170_v30 = vpop.permute.xlu1 %1169  ;;  %v3387_v42 = vld [vmem:[%s3717_s4 + $0x34] ss:$12 sps:$4 sm:$0xff]   ;;  %v3394_v43 = vld [vmem:[%s3717_s4 + $0x30] ss:$12 sps:$4 sm:$0xff]  }
 0x332   :  { %2514 = vpow2.f32 %v2079_v50  ;;  %v2081_v59 = vmul.f32 -1.442695, %v1117_v52  ;;  %vm1172_vm7 = vcmp.eq.s32.totalorder %v1170_v30, 1  ;;  %v3400_v46 = vld [vmem:[%s3717_s4 + $0x38] ss:$12 sps:$4 sm:$0xff]  }
 0x333   :  { %v2082_v62 = vmul.f32 -1.442695, %v1118_v58  ;;  %v3406_v49 = vld [vmem:[%s3717_s4 + $0x4c] ss:$12 sps:$4 sm:$0xff]   ;;  %v3413_v50 = vld [vmem:[%s3717_s4 + $0x48] ss:$12 sps:$4 sm:$0xff]  }
 0x334   :  { %2516 = vpow2.f32 %v2081_v59  ;;  %v3419_v52 = vld [vmem:[%s3717_s4 + $0x50] ss:$12 sps:$4 sm:$0xff]   ;;  %v3432_v55 = vld [vmem:[%s3717_s4 + $0x60] ss:$12 sps:$4 sm:$0xff]   ;;  %v3438_v58 = vld [vmem:[%s3717_s4 + $0x68] ss:$12 sps:$4 sm:$0xff]  }
 0x335   :  { %2518 = vpow2.f32 %v2080_v60  ;;  %v3425_v54 = vld [vmem:[%s3717_s4 + $0x64] ss:$12 sps:$4 sm:$0xff]   ;;  %v3444_v59 = vld [vmem:[%s3717_s4 + $0x7c] ss:$12 sps:$4 sm:$0xff]  }
 0x336   :  { %2520 = vpow2.f32 %v2082_v62  ;;  %v3451_v60 = vld [vmem:[%s3717_s4 + $0x78] ss:$12 sps:$4 sm:$0xff]   ;;  %v3457_v62 = vld [vmem:[%s3717_s4 + $0x80] ss:$12 sps:$4 sm:$0xff]  }
 0x33c   :  { %v2515_v63 = vpop.eup %2514 }
 0x33d   :  { %v1131_v1 = vadd.f32 1.0, %v2515_v63  ;;  %v3463_v63 = vld [vmem:[%s3717_s4 + $0x94] ss:$12 sps:$4 sm:$0xff]  }
 0x33e   :  { %v2517_v11 = vpop.eup %2516 }
 0x33f   :  { %2522 = vrcp.f32 %v1131_v1  ;;  %v1133_v22 = vadd.f32 1.0, %v2517_v11  ;;  %v2519_v18 = vpop.eup %2518  ;;  %v3470_v1 = vld [vmem:[%s3717_s4 + $0x90] ss:$12 sps:$4 sm:$0xff]   ;;  %v3476_v11 = vld [vmem:[%s3717_s4 + $0x98] ss:$12 sps:$4 sm:$0xff]  }
 0x340   :  { %v2521_v13 = vpop.eup %2520  ;;  %v1132_v20 = vadd.f32 1.0, %v2519_v18  ;;  %v3489_v18 = vld [vmem:[%s3717_s4 + $0xa8] ss:$12 sps:$4 sm:$0xff]  }
 0x341   :  { %2524 = vrcp.f32 %v1133_v22  ;;  %v1134_v21 = vadd.f32 1.0, %v2521_v13  ;;  %v3482_v22 = vld [vmem:[%s3717_s4 + $0xac] ss:$12 sps:$4 sm:$0xff]   ;;  %v3495_v13 = vld [vmem:[%s3717_s4 + $0xb0] ss:$12 sps:$4 sm:$0xff]  }
 0x342   :  { %2526 = vrcp.f32 %v1132_v20  ;;  %v1179_v20 = vunpack.c.l.bf16 %v3168_v57 }
 0x343   :  { %2528 = vrcp.f32 %v1134_v21 }
 0x349   :  { %v2523_v16 = vpop.eup %2522 }
 0x34a   :  { %v1145_v53 = vmul.f32 %v2523_v16, %v1143_v12  ;;  %v1180_v16 = vunpack.c.l.bf16 %v3172_v6 }
 0x34b   :  { %v2525_v8 = vpop.eup %2524 }
 0x34c   :  { %v1147_v44 = vadd.f32 %v1145_v53, %v1026_v27  ;;  %v1146_v24 = vmul.f32 %v2525_v8, %v1144_v10  ;;  %v2527_v23 = vpop.eup %2526  ;;  %v1182_v8 = vunpack.c.h.bf16 %v3168_v57 }
 0x34d   :  { %v2529_v45 = vpop.eup %2528  ;;  %v1151_v37 = vsub.f32 1.0, %v2527_v23  ;;  %v1155_v7 = vmul.f32 %v2527_v23, %v3286_v2 }
 0x34e   :  { %2530 = vtanh.f32 %v1147_v44  ;;  %v1148_v25 = vadd.f32 %v1146_v24, %v1029_v56  ;;  %v1152_v17 = vsub.f32 1.0, %v2529_v45  ;;  %v1156_v15 = vmul.f32 %v2529_v45, %v3288_v5 }
 0x350   :  { %2532 = vtanh.f32 %v1148_v25  ;;  %v1183_v25 = vunpack.c.h.bf16 %v3172_v6 }
 0x358   :  { %v2531_v31 = vpop.eup %2530 }
 0x359   :  { %v1153_v28 = vmul.f32 %v2531_v31, %v1151_v37 }
 0x35a   :  { %v2533_v48 = vpop.eup %2532 }
 0x35b   :  { %v1154_v19 = vmul.f32 %v2533_v48, %v1152_v17  ;;  %v1157_v3 = vadd.f32 %v1155_v7, %v1153_v28 }
 0x35d   :  { %v1158_v32 = vadd.f32 %v1156_v15, %v1154_v19  ;;  %v3343_v34 = vsel %vm1171_vm6, %v1157_v3, %v3286_v2  ;;  %v3359_v2 = vld [vmem:[%s3717_s4 + $0x8] ss:$12 sps:$4 sm:$0xff]  }
 0x35f   :  { %v3346_v35 = vsel %vm1172_vm7, %v1158_v32, %v3288_v5  ;;  %v3365_v5 = vld [vmem:[%s3717_s4 + $0x1c] ss:$12 sps:$4 sm:$0xff]  }
 0x360   :  { %v1185_v36 = vpack.c.bf16 %v3346_v35, %v3343_v34 }
 0x362   :  { %1219 = vmatmul.mubr.bf16.vlgmr.msra.gmra.mrb[28].mxu1 %v1185_v36  ;;  %2310 = vmatmul.mubr.bf16.vlgmr.msra.gmra.mrb[44].mxu0 %v1185_v36 }
 0x363   :  { %1342 = vmatpush1.bf16.msra.mxu1 %v3353_v38  ;;  %2314 = vmatpush3.bf16.msra.mxu0 %v3359_v2 }
 0x364   :  { %1343 = vmatprep.subr.bf16.mxu1 %v3365_v5  ;;  %2315 = vmatprep.subr.bf16.mxu0 %v3741_v61 }
 0x365   :  { %1373 = vmatprep.mubr.bf16.mxu1 %v3742_v51  ;;  %2329 = vmatprep.mubr.msk.bf16.mxu0 %vm2694_vm8, %v3741_v61 }
 0x367   :  { %1344 = vmatpush1.bf16.msra.mxu1 %v3375_v39  ;;  %2316 = vmatpush3.bf16.msra.mxu0 %v3381_v41 }
 0x368   :  { %1345 = vmatprep.subr.bf16.mxu1 %v3387_v42  ;;  %2317 = vmatprep.subr.bf16.mxu0 %v3741_v61 }
 0x36b   :  { %1346 = vmatpush1.bf16.msra.mxu1 %v3394_v43  ;;  %2318 = vmatpush3.bf16.msra.mxu0 %v3400_v46 }
 0x36c   :  { %1347 = vmatprep.subr.bf16.mxu1 %v3406_v49  ;;  %2319 = vmatprep.subr.bf16.mxu0 %v3741_v61 }
 0x36f   :  { %1348 = vmatpush1.bf16.msra.mxu1 %v3413_v50  ;;  %2320 = vmatpush3.bf16.msra.mxu0 %v3419_v52 }
 0x370   :  { %1349 = vmatprep.subr.bf16.mxu1 %v3425_v54  ;;  %2321 = vmatprep.subr.bf16.mxu0 %v3741_v61 }
 0x373   :  { %1350 = vmatpush1.bf16.msra.mxu1 %v3432_v55  ;;  %2322 = vmatpush3.bf16.msra.mxu0 %v3438_v58 }
 0x374   :  { %1351 = vmatprep.subr.bf16.mxu1 %v3444_v59  ;;  %2323 = vmatprep.subr.bf16.mxu0 %v3741_v61 }
 0x377   :  { %1352 = vmatpush1.bf16.msra.mxu1 %v3451_v60  ;;  %2324 = vmatpush3.bf16.msra.mxu0 %v3457_v62 }
 0x378   :  { %1353 = vmatprep.subr.bf16.mxu1 %v3463_v63  ;;  %2325 = vmatprep.subr.bf16.mxu0 %v3741_v61 }
 0x37b   :  { %1354 = vmatpush1.bf16.msra.mxu1 %v3470_v1  ;;  %2326 = vmatpush3.bf16.msra.mxu0 %v3476_v11 }
 0x37c   :  { %1355 = vmatprep.subr.bf16.mxu1 %v3482_v22  ;;  %2327 = vmatprep.subr.bf16.mxu0 %v3741_v61 }
 0x37f   :  { %1356 = vmatpush1.bf16.msra.mxu1 %v3489_v18  ;;  %2328 = vmatpush3.bf16.msra.mxu0 %v3495_v13 }
 0x380   :  { %1496 = vmatprep.subr.bf16.mxu1 %v3328_v29  ;;  %2333 = vmatprep.subr.bf16.mxu0 %v3741_v61 }
 0x435   :  { %v1220_v12 = vpop.f32.mrb[28].mxu1  ;;  %v1263_v21 = vpop.f32.mrb[44].mxu0 }
 0x436   :  { %v1270_v27 = vadd.f32 %v1220_v12, %v1179_v20  ;;  %v1222_v53 = vpop.f32.mrb[29].mxu1  ;;  %v2311_v10 = vpop.f32.mrb[45].mxu0  ;;  %v1298_v32 = vadd.f32 %v3215_v4, %v1263_v21  ;;  %v1181_v12 = vunpack.c.l.bf16 %v3138_v26 }
 0x437   :  { %v1271_v56 = vadd.f32 %v1222_v53, %v1180_v16  ;;  %v1224_v44 = vpop.f32.mrb[30].mxu1  ;;  %v1266_v24 = vpop.f32.mrb[46].mxu0  ;;  %v1184_v10 = vunpack.c.h.bf16 %v3138_v26 }
 0x438   :  { %v2083_v23 = vmul.f32 -1.442695, %v1270_v27  ;;  %v1272_v45 = vadd.f32 %v1224_v44, %v1182_v8  ;;  %v1226_v37 = vpop.f32.mrb[31].mxu1  ;;  %v2312_v31 = vpop.f32.mrb[47].mxu0  ;;  %v1299_v27 = vadd.f32 %v3215_v4, %v1266_v24 }
 0x439   :  { %v1273_v7 = vadd.f32 %v1226_v37, %v1183_v25  ;;  %v2084_v28 = vmul.f32 -1.442695, %v1271_v56  ;;  %v1322_v26 = vpop.permute.xlu0 %1321 }
 0x43a   :  { %2534 = vpow2.f32 %v2083_v23  ;;  %v2085_v17 = vmul.f32 -1.442695, %v1272_v45  ;;  %vm1326_vm9 = vcmp.eq.s32.totalorder %v1322_v26, 1 }
 0x43b   :  { %v2086_v48 = vmul.f32 -1.442695, %v1273_v7 }
 0x43c   :  { %2536 = vpow2.f32 %v2085_v17 }
 0x43d   :  { %2538 = vpow2.f32 %v2084_v28 }
 0x43e   :  { %2540 = vpow2.f32 %v2086_v48 }
 0x444   :  { %v2535_v15 = vpop.eup %2534 }
 0x445   :  { %v1286_v19 = vadd.f32 1.0, %v2535_v15  ;;  %v1325_v15 = vpop.permute.xlu1 %1324 }
 0x446   :  { %v2537_v57 = vpop.eup %2536  ;;  %vm1327_vm10 = vcmp.eq.s32.totalorder %v1325_v15, 1 }
 0x447   :  { %2542 = vrcp.f32 %v1286_v19  ;;  %v1288_v3 = vadd.f32 1.0, %v2537_v57  ;;  %v2539_v33 = vpop.eup %2538 }
 0x448   :  { %v2541_v6 = vpop.eup %2540  ;;  %v1287_v30 = vadd.f32 1.0, %v2539_v33 }
 0x449   :  { %2544 = vrcp.f32 %v1288_v3  ;;  %v1289_v36 = vadd.f32 1.0, %v2541_v6 }
 0x44a   :  { %2546 = vrcp.f32 %v1287_v30  ;;  %v1335_v30 = vunpack.c.l.bf16 %v3186_v0 }
 0x44b   :  { %2548 = vrcp.f32 %v1289_v36 }
 0x451   :  { %v2543_v20 = vpop.eup %2542 }
 0x452   :  { %v1300_v16 = vmul.f32 %v2543_v20, %v1298_v32 }
 0x453   :  { %v2545_v53 = vpop.eup %2544 }
 0x454   :  { %v1302_v8 = vadd.f32 %v1300_v16, %v1181_v12  ;;  %v1301_v56 = vmul.f32 %v2545_v53, %v1299_v27  ;;  %v2547_v25 = vpop.eup %2546  ;;  %v1337_v12 = vunpack.c.h.bf16 %v3184_v9 }
 0x455   :  { %v2549_v23 = vpop.eup %2548  ;;  %v1306_v21 = vsub.f32 1.0, %v2547_v25  ;;  %v1310_v37 = vmul.f32 %v2547_v25, %v3343_v34 }
 0x456   :  { %2550 = vtanh.f32 %v1302_v8  ;;  %v1303_v44 = vadd.f32 %v1301_v56, %v1184_v10  ;;  %v1307_v31 = vsub.f32 1.0, %v2549_v23  ;;  %v1311_v24 = vmul.f32 %v2549_v23, %v3346_v35 }
 0x457   :  { %v1338_v10 = vunpack.c.h.bf16 %v3186_v0 }
 0x458   :  { %2552 = vtanh.f32 %v1303_v44 }
 0x460   :  { %v2551_v45 = vpop.eup %2550 }
 0x461   :  { %v1308_v7 = vmul.f32 %v2551_v45, %v1306_v21 }
 0x462   :  { %v2553_v17 = vpop.eup %2552 }
 0x463   :  { %v1309_v28 = vmul.f32 %v2553_v17, %v1307_v31  ;;  %v1312_v48 = vadd.f32 %v1310_v37, %v1308_v7 }
 0x465   :  { %v1313_v19 = vadd.f32 %v1311_v24, %v1309_v28  ;;  %v3511_v57 = vsel %vm1326_vm9, %v1312_v48, %v3343_v34  ;;  %v1334_v34 = vunpack.c.l.bf16 %v3184_v9 }
 0x467   :  { %v3514_v3 = vsel %vm1327_vm10, %v1313_v19, %v3346_v35  ;;  %v1336_v19 = vunpack.c.l.bf16 %v3158_v14 }
 0x468   :  { %v1340_v33 = vpack.c.bf16 %v3514_v3, %v3511_v57 }
 0x46a   :  { %1374 = vmatmul.mubr.bf16.vlgmr.msra.gmra.mrb[32].mxu1 %v1340_v33  ;;  %2330 = vmatmul.mubr.bf16.vlgmr.msra.gmra.mrb[48].mxu0 %v1340_v33 }
 0x46b   :  { %1497 = vmatpush1.bf16.msra.mxu1 %v3353_v38  ;;  %2334 = vmatpush3.bf16.msra.mxu0 %v3359_v2 }
 0x46c   :  { %1498 = vmatprep.subr.bf16.mxu1 %v3365_v5  ;;  %2335 = vmatprep.subr.bf16.mxu0 %v3741_v61 }
 0x46d   :  { %1528 = vmatprep.mubr.bf16.mxu1 %v3742_v51  ;;  %2349 = vmatprep.mubr.msk.bf16.mxu0 %vm2694_vm8, %v3741_v61 }
 0x46f   :  { %1499 = vmatpush1.bf16.msra.mxu1 %v3375_v39  ;;  %2336 = vmatpush3.bf16.msra.mxu0 %v3381_v41 }
 0x470   :  { %1500 = vmatprep.subr.bf16.mxu1 %v3387_v42  ;;  %2337 = vmatprep.subr.bf16.mxu0 %v3741_v61 }
 0x473   :  { %1501 = vmatpush1.bf16.msra.mxu1 %v3394_v43  ;;  %2338 = vmatpush3.bf16.msra.mxu0 %v3400_v46 }
 0x474   :  { %1502 = vmatprep.subr.bf16.mxu1 %v3406_v49  ;;  %2339 = vmatprep.subr.bf16.mxu0 %v3741_v61 }
 0x477   :  { %1503 = vmatpush1.bf16.msra.mxu1 %v3413_v50  ;;  %2340 = vmatpush3.bf16.msra.mxu0 %v3419_v52 }
 0x478   :  { %1504 = vmatprep.subr.bf16.mxu1 %v3425_v54  ;;  %2341 = vmatprep.subr.bf16.mxu0 %v3741_v61 }
 0x47b   :  { %1505 = vmatpush1.bf16.msra.mxu1 %v3432_v55  ;;  %2342 = vmatpush3.bf16.msra.mxu0 %v3438_v58 }
 0x47c   :  { %1506 = vmatprep.subr.bf16.mxu1 %v3444_v59  ;;  %2343 = vmatprep.subr.bf16.mxu0 %v3741_v61 }
 0x47f   :  { %1507 = vmatpush1.bf16.msra.mxu1 %v3451_v60  ;;  %2344 = vmatpush3.bf16.msra.mxu0 %v3457_v62 }
 0x480   :  { %1508 = vmatprep.subr.bf16.mxu1 %v3463_v63  ;;  %2345 = vmatprep.subr.bf16.mxu0 %v3741_v61 }
 0x483   :  { %1509 = vmatpush1.bf16.msra.mxu1 %v3470_v1  ;;  %2346 = vmatpush3.bf16.msra.mxu0 %v3476_v11 }
 0x484   :  { %1510 = vmatprep.subr.bf16.mxu1 %v3482_v22  ;;  %2347 = vmatprep.subr.bf16.mxu0 %v3741_v61 }
 0x487   :  { %1511 = vmatpush1.bf16.msra.mxu1 %v3489_v18  ;;  %2348 = vmatpush3.bf16.msra.mxu0 %v3495_v13 }
 0x488   :  { %1651 = vmatprep.subr.bf16.mxu1 %v3328_v29  ;;  %2353 = vmatprep.subr.bf16.mxu0 %v3741_v61 }
 0x53d   :  { %v1375_v35 = vpop.f32.mrb[32].mxu1  ;;  %v1418_v6 = vpop.f32.mrb[48].mxu0 }
 0x53e   :  { %v1425_v32 = vadd.f32 %v1375_v35, %v1334_v34  ;;  %v1377_v36 = vpop.f32.mrb[33].mxu1  ;;  %v2331_v20 = vpop.f32.mrb[49].mxu0  ;;  %v1453_v48 = vadd.f32 %v3215_v4, %v1418_v6 }
 0x53f   :  { %v1426_v16 = vadd.f32 %v1377_v36, %v1335_v30  ;;  %v1379_v27 = vpop.f32.mrb[34].mxu1  ;;  %v1421_v53 = vpop.f32.mrb[50].mxu0  ;;  %v1339_v30 = vunpack.c.h.bf16 %v3158_v14 }
 0x540   :  { %v2087_v8 = vmul.f32 -1.442695, %v1425_v32  ;;  %v1427_v56 = vadd.f32 %v1379_v27, %v1337_v12  ;;  %v1381_v44 = vpop.f32.mrb[35].mxu1  ;;  %v2332_v25 = vpop.f32.mrb[51].mxu0  ;;  %v1454_v34 = vadd.f32 %v3215_v4, %v1421_v53 }
 0x541   :  { %v1428_v23 = vadd.f32 %v1381_v44, %v1338_v10  ;;  %v2088_v45 = vmul.f32 -1.442695, %v1426_v16  ;;  %v1477_v14 = vpop.permute.xlu0 %1476 }
 0x542   :  { %2554 = vpow2.f32 %v2087_v8  ;;  %v2089_v21 = vmul.f32 -1.442695, %v1427_v56  ;;  %vm1481_vm11 = vcmp.eq.s32.totalorder %v1477_v14, 1 }
 0x543   :  { %v2090_v37 = vmul.f32 -1.442695, %v1428_v23  ;;  %v1480_v23 = vpop.permute.xlu1 %1479 }
 0x544   :  { %2556 = vpow2.f32 %v2089_v21  ;;  %vm1482_vm12 = vcmp.eq.s32.totalorder %v1480_v23, 1 }
 0x545   :  { %2558 = vpow2.f32 %v2088_v45 }
 0x546   :  { %2560 = vpow2.f32 %v2090_v37 }
 0x54c   :  { %v2555_v31 = vpop.eup %2554 }
 0x54d   :  { %v1441_v7 = vadd.f32 1.0, %v2555_v31 }
 0x54e   :  { %v2557_v9 = vpop.eup %2556 }
 0x54f   :  { %2562 = vrcp.f32 %v1441_v7  ;;  %v1443_v17 = vadd.f32 1.0, %v2557_v9  ;;  %v2559_v24 = vpop.eup %2558  ;;  %v1490_v9 = vunpack.c.l.bf16 %v3194_v47 }
 0x550   :  { %v2561_v0 = vpop.eup %2560  ;;  %v1442_v28 = vadd.f32 1.0, %v2559_v24 }
 0x551   :  { %2564 = vrcp.f32 %v1443_v17  ;;  %v1444_v26 = vadd.f32 1.0, %v2561_v0 }
 0x552   :  { %2566 = vrcp.f32 %v1442_v28  ;;  %v1492_v28 = vunpack.c.h.bf16 %v3192_v40 }
 0x553   :  { %2568 = vrcp.f32 %v1444_v26 }
 0x559   :  { %v2563_v15 = vpop.eup %2562 }
 0x55a   :  { %v1455_v33 = vmul.f32 %v2563_v15, %v1453_v48 }
 0x55b   :  { %v2565_v35 = vpop.eup %2564 }
 0x55c   :  { %v1457_v32 = vadd.f32 %v1455_v33, %v1336_v19  ;;  %v1456_v36 = vmul.f32 %v2565_v35, %v1454_v34  ;;  %v2567_v12 = vpop.eup %2566  ;;  %v1493_v19 = vunpack.c.h.bf16 %v3194_v47 }
 0x55d   :  { %v2569_v16 = vpop.eup %2568  ;;  %v1461_v6 = vsub.f32 1.0, %v2567_v12  ;;  %v1465_v10 = vmul.f32 %v2567_v12, %v3511_v57 }
 0x55e   :  { %2570 = vtanh.f32 %v1457_v32  ;;  %v1458_v20 = vadd.f32 %v1456_v36, %v1339_v30  ;;  %v1462_v8 = vsub.f32 1.0, %v2569_v16  ;;  %v1466_v4 = vmul.f32 %v2569_v16, %v3514_v3 }
 0x560   :  { %2572 = vtanh.f32 %v1458_v20 }
 0x568   :  { %v2571_v27 = vpop.eup %2570 }
 0x569   :  { %v1463_v56 = vmul.f32 %v2571_v27, %v1461_v6 }
 0x56a   :  { %v2573_v44 = vpop.eup %2572 }
 0x56b   :  { %v1464_v53 = vmul.f32 %v2573_v44, %v1462_v8  ;;  %v1467_v25 = vadd.f32 %v1465_v10, %v1463_v56  ;;  %v3613_v8 = vld [vmem:[%s3718_s5] ss:$0 sm:$0xff] }
 0x56d   :  { %v1468_v21 = vadd.f32 %v1466_v4, %v1464_v53  ;;  %v3564_v45 = vsel %vm1481_vm11, %v1467_v25, %v3511_v57  ;;  %v1489_v57 = vunpack.c.l.bf16 %v3192_v40  ;;  %v3743_v53 = vld [vmem:[#allocation8_spill] sm:$0xff] }
 0x56e   :  { %v1491_v25 = vunpack.c.l.bf16 %v3743_v53 }
 0x56f   :  { %v3567_v37 = vsel %vm1482_vm12, %v1468_v21, %v3514_v3 }
 0x570   :  { %v1495_v31 = vpack.c.bf16 %v3567_v37, %v3564_v45 }
 0x572   :  { %1529 = vmatmul.mubr.bf16.vlgmr.msra.gmra.mrb[36].mxu1 %v1495_v31  ;;  %2350 = vmatmul.mubr.bf16.vlgmr.msra.gmra.mrb[52].mxu0 %v1495_v31  ;;  %v1494_v31 = vunpack.c.h.bf16 %v3743_v53 }
 0x573   :  { %1652 = vmatpush1.bf16.msra.mxu1 %v3353_v38  ;;  %2354 = vmatpush3.bf16.msra.mxu0 %v3359_v2 }
 0x574   :  { %1653 = vmatprep.subr.bf16.mxu1 %v3365_v5  ;;  %2355 = vmatprep.subr.bf16.mxu0 %v3741_v61 }
 0x575   :  { %1683 = vmatprep.mubr.bf16.mxu1 %v3742_v51  ;;  %2369 = vmatprep.mubr.msk.bf16.mxu0 %vm2694_vm8, %v3741_v61 }
 0x577   :  { %1654 = vmatpush1.bf16.msra.mxu1 %v3375_v39  ;;  %2356 = vmatpush3.bf16.msra.mxu0 %v3381_v41 }
 0x578   :  { %1655 = vmatprep.subr.bf16.mxu1 %v3387_v42  ;;  %2357 = vmatprep.subr.bf16.mxu0 %v3741_v61 }
 0x57b   :  { %1656 = vmatpush1.bf16.msra.mxu1 %v3394_v43  ;;  %2358 = vmatpush3.bf16.msra.mxu0 %v3400_v46 }
 0x57c   :  { %1657 = vmatprep.subr.bf16.mxu1 %v3406_v49  ;;  %2359 = vmatprep.subr.bf16.mxu0 %v3741_v61 }
 0x57f   :  { %1658 = vmatpush1.bf16.msra.mxu1 %v3413_v50  ;;  %2360 = vmatpush3.bf16.msra.mxu0 %v3419_v52 }
 0x580   :  { %1659 = vmatprep.subr.bf16.mxu1 %v3425_v54  ;;  %2361 = vmatprep.subr.bf16.mxu0 %v3741_v61 }
 0x583   :  { %1660 = vmatpush1.bf16.msra.mxu1 %v3432_v55  ;;  %2362 = vmatpush3.bf16.msra.mxu0 %v3438_v58 }
 0x584   :  { %1661 = vmatprep.subr.bf16.mxu1 %v3444_v59  ;;  %2363 = vmatprep.subr.bf16.mxu0 %v3741_v61 }
 0x587   :  { %1662 = vmatpush1.bf16.msra.mxu1 %v3451_v60  ;;  %2364 = vmatpush3.bf16.msra.mxu0 %v3457_v62 }
 0x588   :  { %1663 = vmatprep.subr.bf16.mxu1 %v3463_v63  ;;  %2365 = vmatprep.subr.bf16.mxu0 %v3741_v61 }
 0x58b   :  { %1664 = vmatpush1.bf16.msra.mxu1 %v3470_v1  ;;  %2366 = vmatpush3.bf16.msra.mxu0 %v3476_v11 }
 0x58c   :  { %1665 = vmatprep.subr.bf16.mxu1 %v3482_v22  ;;  %2367 = vmatprep.subr.bf16.mxu0 %v3741_v61 }
 0x58f   :  { %1666 = vmatpush1.bf16.msra.mxu1 %v3489_v18  ;;  %2368 = vmatpush3.bf16.msra.mxu0 %v3495_v13 }
 0x590   :  { %1806 = vmatprep.subr.bf16.mxu1 %v3328_v29  ;;  %2373 = vmatprep.subr.bf16.mxu0 %v3741_v61 }
 0x645   :  { %v1530_v3 = vpop.f32.mrb[36].mxu1  ;;  %v1573_v7 = vpop.f32.mrb[52].mxu0 }
 0x646   :  { %v1580_v17 = vadd.f32 %v1530_v3, %v1489_v57  ;;  %v1532_v24 = vpop.f32.mrb[37].mxu1  ;;  %v2351_v0 = vpop.f32.mrb[53].mxu0  ;;  %v1608_v56 = vadd.f32 %v3613_v8, %v1573_v7 }
 0x647   :  { %v1581_v48 = vadd.f32 %v1532_v24, %v1490_v9  ;;  %v1534_v26 = vpop.f32.mrb[38].mxu1  ;;  %v1576_v15 = vpop.f32.mrb[54].mxu0 }
 0x648   :  { %v2091_v33 = vmul.f32 -1.442695, %v1580_v17  ;;  %v1582_v29 = vadd.f32 %v1534_v26, %v1492_v28  ;;  %v1536_v34 = vpop.f32.mrb[39].mxu1  ;;  %v2352_v35 = vpop.f32.mrb[55].mxu0  ;;  %v1609_v23 = vadd.f32 %v3613_v8, %v1576_v15 }
 0x649   :  { %v1583_v30 = vadd.f32 %v1536_v34, %v1493_v19  ;;  %v2092_v36 = vmul.f32 -1.442695, %v1581_v48  ;;  %v1632_v34 = vpop.permute.xlu0 %1631  ;;  %v1635_v35 = vpop.permute.xlu1 %1634 }
 0x64a   :  { %2574 = vpow2.f32 %v2091_v33  ;;  %v2093_v32 = vmul.f32 -1.442695, %v1582_v29  ;;  %vm1636_vm13 = vcmp.eq.s32.totalorder %v1632_v34, 1  ;;  %vm1637_vm14 = vcmp.eq.s32.totalorder %v1635_v35, 1  ;;  %v3747_v35 = vld [vmem:[#allocation13_spill] sm:$0xff] }
 0x64b   :  { %v2094_v20 = vmul.f32 -1.442695, %v1583_v30 }
 0x64c   :  { %2576 = vpow2.f32 %v2093_v32 }
 0x64d   :  { %2578 = vpow2.f32 %v2092_v36 }
 0x64e   :  { %2580 = vpow2.f32 %v2094_v20 }
 0x654   :  { %v2575_v12 = vpop.eup %2574 }
 0x655   :  { %v1596_v16 = vadd.f32 1.0, %v2575_v12 }
 0x656   :  { %v2577_v40 = vpop.eup %2576 }
 0x657   :  { %2582 = vrcp.f32 %v1596_v16  ;;  %v1598_v6 = vadd.f32 1.0, %v2577_v40  ;;  %v2579_v27 = vpop.eup %2578 }
 0x658   :  { %v2581_v47 = vpop.eup %2580  ;;  %v1597_v10 = vadd.f32 1.0, %v2579_v27 }
 0x659   :  { %2584 = vrcp.f32 %v1598_v6  ;;  %v1599_v44 = vadd.f32 1.0, %v2581_v47  ;;  %v3746_v47 = vld [vmem:[#allocation10_spill] sm:$0xff] }
 0x65a   :  { %2586 = vrcp.f32 %v1597_v10  ;;  %v1646_v10 = vunpack.c.l.bf16 %v3746_v47  ;;  %v1649_v53 = vunpack.c.h.bf16 %v3746_v47 }
 0x65b   :  { %2588 = vrcp.f32 %v1599_v44 }
 0x661   :  { %v2583_v4 = vpop.eup %2582 }
 0x662   :  { %v1610_v14 = vmul.f32 %v2583_v4, %v1608_v56 }
 0x663   :  { %v2585_v21 = vpop.eup %2584 }
 0x664   :  { %v1612_v57 = vadd.f32 %v1610_v14, %v1491_v25  ;;  %v1611_v3 = vmul.f32 %v2585_v21, %v1609_v23  ;;  %v2587_v17 = vpop.eup %2586 }
 0x665   :  { %v2589_v24 = vpop.eup %2588  ;;  %v1616_v7 = vsub.f32 1.0, %v2587_v17  ;;  %v1620_v28 = vmul.f32 %v2587_v17, %v3564_v45 }
 0x666   :  { %2590 = vtanh.f32 %v1612_v57  ;;  %v1613_v9 = vadd.f32 %v1611_v3, %v1494_v31  ;;  %v1617_v48 = vsub.f32 1.0, %v2589_v24  ;;  %v1621_v15 = vmul.f32 %v2589_v24, %v3567_v37 }
 0x668   :  { %2592 = vtanh.f32 %v1613_v9 }
 0x670   :  { %v2591_v0 = vpop.eup %2590 }
 0x671   :  { %v1618_v26 = vmul.f32 %v2591_v0, %v1616_v7 }
 0x672   :  { %v2593_v19 = vpop.eup %2592 }
 0x673   :  { %v1619_v33 = vmul.f32 %v2593_v19, %v1617_v48  ;;  %v1622_v29 = vadd.f32 %v1620_v28, %v1618_v26  ;;  %v1787_v26 = vpop.permute.xlu0 %1786  ;;  %v1790_v19 = vpop.permute.xlu1 %1789 }
 0x674   :  { %vm1792_vm15 = vcmp.eq.s32.totalorder %v1790_v19, 1 }
 0x675   :  { %v1623_v30 = vadd.f32 %v1621_v15, %v1619_v33  ;;  %v3622_v32 = vsel %vm1636_vm13, %v1622_v29, %v3564_v45 }
 0x677   :  { %v3625_v36 = vsel %vm1637_vm14, %v1623_v30, %v3567_v37  ;;  %v1799_v30 = vunpack.c.l.bf16 %v3747_v35 }
 0x678   :  { %v1650_v20 = vpack.c.bf16 %v3625_v36, %v3622_v32 }
 0x67a   :  { %1684 = vmatmul.mubr.bf16.vlgmr.msra.gmra.mrb[40].mxu1 %v1650_v20  ;;  %2370 = vmatmul.mubr.bf16.vlgmr.msra.gmra.mrb[56].mxu0 %v1650_v20 }
 0x67b   :  { %1807 = vmatpush1.bf16.msra.mxu1 %v3353_v38  ;;  %2374 = vmatpush3.bf16.msra.mxu0 %v3359_v2 }
 0x67c   :  { %1808 = vmatprep.subr.bf16.mxu1 %v3365_v5  ;;  %2375 = vmatprep.subr.bf16.mxu0 %v3741_v61 }
 0x67d   :  { %1838 = vmatprep.mubr.bf16.mxu1 %v3742_v51  ;;  %2389 = vmatprep.mubr.msk.bf16.mxu0 %vm2694_vm8, %v3741_v61  ;;  %v3744_v51 = vld [vmem:[#allocation11_spill] sm:$0xff]  ;;  %vm1791_vm8 = vcmp.eq.s32.totalorder %v1787_v26, 1 }
 0x67e   :  { %v1644_v38 = vunpack.c.l.bf16 %v3744_v51 }
 0x67f   :  { %1809 = vmatpush1.bf16.msra.mxu1 %v3375_v39  ;;  %2376 = vmatpush3.bf16.msra.mxu0 %v3381_v41  ;;  %v3745_v39 = vld [vmem:[#allocation12_spill] sm:$0xff] }
 0x680   :  { %1810 = vmatprep.subr.bf16.mxu1 %v3387_v42  ;;  %2377 = vmatprep.subr.bf16.mxu0 %v3741_v61  ;;  %v1645_v41 = vunpack.c.l.bf16 %v3745_v39 }
 0x683   :  { %1811 = vmatpush1.bf16.msra.mxu1 %v3394_v43  ;;  %2378 = vmatpush3.bf16.msra.mxu0 %v3400_v46 }
 0x684   :  { %1812 = vmatprep.subr.bf16.mxu1 %v3406_v49  ;;  %2379 = vmatprep.subr.bf16.mxu0 %v3741_v61  ;;  %v1647_v49 = vunpack.c.h.bf16 %v3744_v51 }
 0x687   :  { %1813 = vmatpush1.bf16.msra.mxu1 %v3413_v50  ;;  %2380 = vmatpush3.bf16.msra.mxu0 %v3419_v52 }
 0x688   :  { %1814 = vmatprep.subr.bf16.mxu1 %v3425_v54  ;;  %2381 = vmatprep.subr.bf16.mxu0 %v3741_v61 }
 0x68b   :  { %1815 = vmatpush1.bf16.msra.mxu1 %v3432_v55  ;;  %2382 = vmatpush3.bf16.msra.mxu0 %v3438_v58 }
 0x68c   :  { %1816 = vmatprep.subr.bf16.mxu1 %v3444_v59  ;;  %2383 = vmatprep.subr.bf16.mxu0 %v3741_v61 }
 0x68f   :  { %1817 = vmatpush1.bf16.msra.mxu1 %v3451_v60  ;;  %2384 = vmatpush3.bf16.msra.mxu0 %v3457_v62 }
 0x690   :  { %1818 = vmatprep.subr.bf16.mxu1 %v3463_v63  ;;  %2385 = vmatprep.subr.bf16.mxu0 %v3741_v61 }
 0x693   :  { %1819 = vmatpush1.bf16.msra.mxu1 %v3470_v1  ;;  %2386 = vmatpush3.bf16.msra.mxu0 %v3476_v11 }
 0x694   :  { %1820 = vmatprep.subr.bf16.mxu1 %v3482_v22  ;;  %2387 = vmatprep.subr.bf16.mxu0 %v3741_v61  ;;  %v1648_v61 = vunpack.c.h.bf16 %v3745_v39 }
 0x697   :  { %1821 = vmatpush1.bf16.msra.mxu1 %v3489_v18  ;;  %2388 = vmatpush3.bf16.msra.mxu0 %v3495_v13 }
 0x74d   :  { %v1685_v2 = vpop.f32.mrb[40].mxu1  ;;  %v1728_v5 = vpop.f32.mrb[56].mxu0 }
 0x74e   :  { %v1735_v42 = vadd.f32 %v1685_v2, %v1644_v38  ;;  %v1687_v43 = vpop.f32.mrb[41].mxu1  ;;  %v2371_v46 = vpop.f32.mrb[57].mxu0  ;;  %v1763_v40 = vadd.f32 %v3613_v8, %v1728_v5  ;;  %v3748_v38 = vld [vmem:[#allocation14_spill] sm:$0xff] }
 0x74f   :  { %v1736_v50 = vadd.f32 %v1687_v43, %v1645_v41  ;;  %v1689_v52 = vpop.f32.mrb[42].mxu1  ;;  %v1731_v54 = vpop.f32.mrb[58].mxu0  ;;  %v1800_v2 = vunpack.c.l.bf16 %v3748_v38  ;;  %v1803_v46 = vunpack.c.h.bf16 %v3748_v38 }
 0x750   :  { %v2095_v55 = vmul.f32 -1.442695, %v1735_v42  ;;  %v1737_v58 = vadd.f32 %v1689_v52, %v1647_v49  ;;  %v1691_v59 = vpop.f32.mrb[43].mxu1  ;;  %v2372_v60 = vpop.f32.mrb[59].mxu0  ;;  %v1764_v44 = vadd.f32 %v3613_v8, %v1731_v54 }
 0x751   :  { %v1738_v62 = vadd.f32 %v1691_v59, %v1648_v61  ;;  %v2096_v1 = vmul.f32 -1.442695, %v1736_v50 }
 0x752   :  { %2594 = vpow2.f32 %v2095_v55  ;;  %v2097_v63 = vmul.f32 -1.442695, %v1737_v58 }
 0x753   :  { %v2098_v11 = vmul.f32 -1.442695, %v1738_v62 }
 0x754   :  { %2596 = vpow2.f32 %v2097_v63 }
 0x755   :  { %2598 = vpow2.f32 %v2096_v1 }
 0x756   :  { %2600 = vpow2.f32 %v2098_v11 }
 0x75c   :  { %v2595_v22 = vpop.eup %2594 }
 0x75d   :  { %v1751_v18 = vadd.f32 1.0, %v2595_v22 }
 0x75e   :  { %v2597_v13 = vpop.eup %2596 }
 0x75f   :  { %2602 = vrcp.f32 %v1751_v18  ;;  %v1753_v45 = vadd.f32 1.0, %v2597_v13  ;;  %v2599_v37 = vpop.eup %2598 }
 0x760   :  { %v2601_v12 = vpop.eup %2600  ;;  %v1752_v16 = vadd.f32 1.0, %v2599_v37 }
 0x761   :  { %2604 = vrcp.f32 %v1753_v45  ;;  %v1754_v6 = vadd.f32 1.0, %v2601_v12  ;;  %v3749_v12 = vld [vmem:[#allocation9_spill] sm:$0xff] }
 0x762   :  { %2606 = vrcp.f32 %v1752_v16  ;;  %v1801_v16 = vunpack.c.l.bf16 %v3749_v12  ;;  %v1804_v47 = vunpack.c.h.bf16 %v3749_v12 }
 0x763   :  { %2608 = vrcp.f32 %v1754_v6 }
 0x769   :  { %v2603_v27 = vpop.eup %2602 }
 0x76a   :  { %v1765_v56 = vmul.f32 %v2603_v27, %v1763_v40 }
 0x76b   :  { %v2605_v4 = vpop.eup %2604 }
 0x76c   :  { %v1767_v25 = vadd.f32 %v1765_v56, %v1646_v10  ;;  %v1766_v14 = vmul.f32 %v2605_v4, %v1764_v44  ;;  %v2607_v21 = vpop.eup %2606 }
 0x76d   :  { %v2609_v31 = vpop.eup %2608  ;;  %v1771_v57 = vsub.f32 1.0, %v2607_v21  ;;  %v1775_v9 = vmul.f32 %v2607_v21, %v3622_v32 }
 0x76e   :  { %2610 = vtanh.f32 %v1767_v25  ;;  %v1768_v23 = vadd.f32 %v1766_v14, %v1649_v53  ;;  %v1772_v17 = vsub.f32 1.0, %v2609_v31  ;;  %v1776_v0 = vmul.f32 %v2609_v31, %v3625_v36 }
 0x770   :  { %2612 = vtanh.f32 %v1768_v23  ;;  %v1942_v23 = vpop.permute.xlu0 %1941 }
 0x771   :  { %vm1946_vm0 = vcmp.eq.s32.totalorder %v1942_v23, 1 }
 0x778   :  { %v2611_v3 = vpop.eup %2610 }
 0x779   :  { %v1773_v24 = vmul.f32 %v2611_v3, %v1771_v57 }
 0x77a   :  { %v2613_v7 = vpop.eup %2612 }
 0x77b   :  { %v1774_v28 = vmul.f32 %v2613_v7, %v1772_v17  ;;  %v1777_v48 = vadd.f32 %v1775_v9, %v1773_v24  ;;  %v2103_v17 = vld [vmem:[%s3719_s6] ss:$0 sm:$0xff]  ;;  %s2667_s6 = scalar_lea.vmem %s2002_s13, 256 }
 0x77c   :  { %p2668_p0 = scmp.ne.s32.totalorder %s2002_s13, %s2667_s6  ;;  %p2673_p2 = scmp.lt.s32.totalorder %s2667_s6, %s2667_s6 }
 0x77d   :  { %v1778_v15 = vadd.f32 %v1776_v0, %v1774_v28  ;;  %v3673_v33 = vsel %vm1791_vm8, %v1777_v48, %v3622_v32  ;;  %v1802_v32 = vunpack.c.h.bf16 %v3747_v35 }
 0x77e   :  { %p2674_p3 = por %p2673_p2, %p2672_p1 }
 0x77f   :  { %v3676_v29 = vsel %vm1792_vm15, %v1778_v15, %v3625_v36 }
 0x780   :  { %v1805_v34 = vpack.c.bf16 %v3676_v29, %v3673_v33  ;;  %p2675_p4 = pnand %p2674_p3, %p2668_p0 }
 0x782   :  { %1839 = vmatmul.mubr.bf16.vlgmr.msra.gmra.mrb[44].mxu1 %v1805_v34  ;;  %2390 = vmatmul.mubr.bf16.vlgmr.msra.gmra.mrb[60].mxu0 %v1805_v34 }
 0x855   :  { %v1840_v20 = vpop.f32.mrb[44].mxu1  ;;  %v1883_v51 = vpop.f32.mrb[60].mxu0 }
 0x856   :  { %v1890_v5 = vadd.f32 %v1840_v20, %v1799_v30  ;;  %v1842_v39 = vpop.f32.mrb[45].mxu1  ;;  %v2391_v41 = vpop.f32.mrb[61].mxu0  ;;  %v1918_v13 = vadd.f32 %v3613_v8, %v1883_v51 }
 0x857   :  { %v1891_v42 = vadd.f32 %v1842_v39, %v1800_v2  ;;  %v1844_v43 = vpop.f32.mrb[46].mxu1  ;;  %v1886_v36 = vpop.f32.mrb[62].mxu0 }
 0x858   :  { %v2099_v49 = vmul.f32 -1.442695, %v1890_v5  ;;  %v1892_v50 = vadd.f32 %v1844_v43, %v1802_v32  ;;  %v1846_v52 = vpop.f32.mrb[47].mxu1  ;;  %v2392_v54 = vpop.f32.mrb[63].mxu0  ;;  %v1919_v6 = vadd.f32 %v3613_v8, %v1886_v36 }
 0x859   :  { %v1893_v61 = vadd.f32 %v1846_v52, %v1803_v46  ;;  %v2100_v58 = vmul.f32 -1.442695, %v1891_v42  ;;  %v1945_v8 = vpop.permute.xlu1 %1944 }
 0x85a   :  { %2614 = vpow2.f32 %v2099_v49  ;;  %v2101_v55 = vmul.f32 -1.442695, %v1892_v50  ;;  %vm1947_vm1 = vcmp.eq.s32.totalorder %v1945_v8, 1 }
 0x85b   :  { %v2102_v59 = vmul.f32 -1.442695, %v1893_v61 }
 0x85c   :  { %2616 = vpow2.f32 %v2101_v55 }
 0x85d   :  { %2618 = vpow2.f32 %v2100_v58 }
 0x85e   :  { %2620 = vpow2.f32 %v2102_v59 }
 0x864   :  { %v2615_v60 = vpop.eup %2614 }
 0x865   :  { %v1906_v62 = vadd.f32 1.0, %v2615_v60 }
 0x866   :  { %v2617_v63 = vpop.eup %2616 }
 0x867   :  { %2622 = vrcp.f32 %v1906_v62  ;;  %v1908_v1 = vadd.f32 1.0, %v2617_v63  ;;  %v2619_v11 = vpop.eup %2618 }
 0x868   :  { %v2621_v22 = vpop.eup %2620  ;;  %v1907_v18 = vadd.f32 1.0, %v2619_v11 }
 0x869   :  { %2624 = vrcp.f32 %v1908_v1  ;;  %v1909_v45 = vadd.f32 1.0, %v2621_v22 }
 0x86a   :  { %2626 = vrcp.f32 %v1907_v18 }
 0x86b   :  { %2628 = vrcp.f32 %v1909_v45 }
 0x871   :  { %v2623_v37 = vpop.eup %2622 }
 0x872   :  { %v1920_v40 = vmul.f32 %v2623_v37, %v1918_v13 }
 0x873   :  { %v2625_v27 = vpop.eup %2624 }
 0x874   :  { %v1922_v10 = vadd.f32 %v1920_v40, %v1801_v16  ;;  %v1921_v56 = vmul.f32 %v2625_v27, %v1919_v6  ;;  %v2627_v4 = vpop.eup %2626 }
 0x875   :  { %v2629_v53 = vpop.eup %2628  ;;  %v1926_v25 = vsub.f32 1.0, %v2627_v4  ;;  %v1930_v31 = vmul.f32 %v2627_v4, %v3673_v33 }
 0x876   :  { %2630 = vtanh.f32 %v1922_v10  ;;  %v1923_v44 = vadd.f32 %v1921_v56, %v1804_v47  ;;  %v1927_v57 = vsub.f32 1.0, %v2629_v53  ;;  %v1931_v7 = vmul.f32 %v2629_v53, %v3676_v29 }
 0x878   :  { %2632 = vtanh.f32 %v1923_v44 }
 0x880   :  { %v2631_v14 = vpop.eup %2630 }
 0x881   :  { %v1928_v21 = vmul.f32 %v2631_v14, %v1926_v25 }
 0x882   :  { %v2633_v3 = vpop.eup %2632 }
 0x883   :  { %v1932_v9 = vadd.f32 %v1930_v31, %v1928_v21  ;;  %v1929_v24 = vmul.f32 %v2633_v3, %v1927_v57 }
 0x885   :  { %v1948_v0 = vsel %vm1946_vm0, %v1932_v9, %v3673_v33  ;;  %v1933_v28 = vadd.f32 %v1931_v7, %v1929_v24 }
 0x886   :  { %v1964_v48 = vmul.f32 %v2103_v17, %v1948_v0  ;;  %1955 = vst [vmem:[#allocation5] sm:$0xff] %v1948_v0 }
 0x887   :  { %v1949_v26 = vsel %vm1947_vm1, %v1933_v28, %v3676_v29 }
 0x888   :  { %1966 = vadd.xlane.f32.xlu0 %v1964_v48  ;;  %v1965_v19 = vmul.f32 %v2103_v17, %v1949_v26  ;;  %1956 = vst [vmem:[#allocation5 + $0x8] sm:$0xff] %v1949_v26 }
 0x88a   :  { %1968 = vadd.xlane.f32.xlu1 %v1965_v19 }
 0x88b   :  { %2678 = shalt.err (!%p2675_p4)
}
 0x88c   :  { %s2679_s16 = scalar_lea.hbm %s3722_s9, 256 }
 0x88d   :  { %p2680_p5 = scmp.ne.s32.totalorder %s3722_s9, %s2679_s16  ;;  %p2683_p6 = scmp.lt.u32.totalorder %s2679_s16, %s3722_s9 }
 0x88f   :  { %p2685_p7 = pnand %p2683_p6, %p2680_p5 }
 0x891   :  { %2688 = shalt.err (!%p2685_p7)
}
 0x892   :  { %s2696_s20 = smov 128   ;;  %s2697_s21 = smov 8   ;;  %v2104_v15 = vld [vmem:[#allocation4] ss:$0 sm:$0xff]  ;;  %vm1991_vm2 = vcmask 7168  }
 0x893   :  { %2007 = dma.vmem_to_hbm [thread:$0]  %s2002_s13, 256, %s3722_s9, [#allocation6], %s2696_s20, %s2696_s20, %s2697_s21  }
 0x915   :  { %v1967_v33 = vpop.xlane.xlu0 %1966 }
 0x916   :  { %v1977_v29 = vadd.f32 %v2104_v15, %v1967_v33 }
 0x917   :  { %v1969_v34 = vpop.xlane.xlu1 %1968 }
 0x918   :  { %v2105_v35 = vmul.f32 -1.442695, %v1977_v29  ;;  %v1978_v30 = vadd.f32 %v2104_v15, %v1969_v34 }
 0x91a   :  { %2634 = vpow2.f32 %v2105_v35  ;;  %v2106_v20 = vmul.f32 -1.442695, %v1978_v30 }
 0x91c   :  { %2636 = vpow2.f32 %v2106_v20 }
 0x924   :  { %v2635_v51 = vpop.eup %2634 }
 0x925   :  { %v1985_v38 = vadd.f32 1.0, %v2635_v51 }
 0x926   :  { %v2637_v2 = vpop.eup %2636 }
 0x927   :  { %2638 = vrcp.f32 %v1985_v38  ;;  %v1986_v5 = vadd.f32 1.0, %v2637_v2 }
 0x929   :  { %2640 = vrcp.f32 %v1986_v5 }
 0x931   :  { %v2639_v39 = vpop.eup %2638 }
 0x932   :  { %1992 = vst.msk [vmem:[%s3721_s8] sm:$0xff] %vm1991_vm2, %v2639_v39 }
 0x933   :  { %v2641_v41 = vpop.eup %2640 }
 0x934   :  { %1993 = vst.msk [vmem:[%s3721_s8 + $0x8] sm:$0xff] %vm1991_vm2, %v2641_v41 }
 0x935   :  { %2689 = dma.done.wait [#allocation6], 256  }
 0x936   :  { %2690 = vsyncadd [#allocation6], 4294967040 }
 0x937   :  { %2013 = vsyncpa [#allocation6], 1 }

</bundles_post_ra>
